<compile_context>
chip_gen: v7x
topology: tpu7x:2x2x1
jax: 0.10.0
libtpu: 0.0.40
codegen_flags: <defaults>
</compile_context>

<pallas_src>
import functools

import numpy as np
import jax
import jax.numpy as jnp
from jax import lax
from jax.experimental import pallas as pl
from jax.experimental.pallas import tpu as pltpu

EPS = 1e-5
K = 3        # conv kernel size of both convolutions
C8 = 8       # channel dim padded to one full sublane tile (unmasked ops/stores)
PAD = 256    # lane padding on the input slab so every tap shift is a static,
             # in-bounds slice (max total shift here = n1-nhw + (K-1)*W+(K-1))


def fused_conv_conv_bn_kernel(x_ref, w1_ref, w2_ref, gamma_ref, beta_ref,
                              mask_ref, o_ref, *, W, n1, inv_cnt):
    # x_ref:     (1, N*H*W + PAD)   lane-dense, zero-padded input slab (Cin==1)
    # w1_ref:    (8, K*K)           conv1 weights, rows >= C1 zero-padded
    # w2_ref:    (8, C1*K*K)        conv2 weights, rows >= C2 zero-padded
    # gamma_ref/beta_ref: (8, 1)    BN affine params, zero-padded rows
    # mask_ref:  (1, N*H*W)         1.0 on the valid H2 x W2 window of each image
    # o_ref:     (8, N*H*W)         padded full-grid output (sliced outside)
    nhw = o_ref.shape[1]
    c8 = o_ref.shape[0]
    c1 = w2_ref.shape[1] // (K * K)
    taps = [kh * W + kw for kh in range(K) for kw in range(K)]

    x = x_ref[...]                  # (1, nhw + PAD)
    w1 = w1_ref[...]                # (8, 9)
    w2 = w2_ref[...]                # (8, 27)

    # ---- conv1 (Cin=1): 9 tap-broadcast FMAs on the VPU, exact f32 ---------
    h1 = jnp.zeros((c8, n1), jnp.float32)
    for t, off in enumerate(taps):
        h1 = h1 + w1[:, t:t + 1] * x[:, off:off + n1]

    # ---- conv2: 27 tap-broadcast FMAs on shifted slices of h1 (XLU shifts) -
    h2 = jnp.zeros((c8, nhw), jnp.float32)
    for ci in range(c1):
        for t, off in enumerate(taps):
            w_col = w2[:, ci * K * K + t:ci * K * K + t + 1]        # (8, 1)
            h2 = h2 + w_col * h1[ci:ci + 1, off:off + nhw]

    # ---- BatchNorm2d (training): masked two-pass moments, EUP rsqrt --------
    m = mask_ref[...]                                               # (1, nhw)
    mean = jnp.sum(h2 * m, axis=1, keepdims=True) * inv_cnt         # (8, 1)
    cent = h2 - mean
    var = jnp.sum(cent * cent * m, axis=1, keepdims=True) * inv_cnt
    scale = gamma_ref[...] * lax.rsqrt(var + EPS)                   # (8, 1)
    o_ref[...] = (scale * cent + beta_ref[...]).astype(o_ref.dtype)


def forward(x, w1, b1, w2, b2, gamma, beta):
    # NOTE: b1 / b2 are intentionally not passed into the kernel.  Through the
    # purely-linear conv2 they add only a per-output-channel constant to h2 on
    # the valid window, which training-mode BN's (h2 - batch_mean) removes
    # exactly (variance is likewise unchanged).
    N, Cin, H, W = x.shape
    assert Cin == 1, "module spec has Conv2d(1, 3, 3) first"
    C1 = w1.shape[0]
    C2 = w2.shape[0]
    H2, W2 = H - 2 * (K - 1), W - 2 * (K - 1)
    nhw = N * H * W
    n1 = nhw + 128    # conv1 evaluated on a slightly longer grid so every
                      # conv2 tap shift (<= 2*W + 2) is a static in-bounds slice

    # --- wrapper-side layout plumbing (free in XLA) --------------------------
    x_flat = jnp.transpose(x, (1, 0, 2, 3)).reshape(Cin, nhw)
    x_flat = jnp.pad(x_flat, ((0, 0), (0, PAD)))                    # (1, nhw+PAD)
    w1m = jnp.pad(w1.reshape(C1, K * K), ((0, C8 - C1), (0, 0)))    # (8, 9)
    w2m = jnp.pad(w2.reshape(C2, C1 * K * K), ((0, C8 - C2), (0, 0)))  # (8, 27)
    gamma_p = jnp.pad(gamma, (0, C8 - C2)).reshape(C8, 1)
    beta_p = jnp.pad(beta, (0, C8 - C2)).reshape(C8, 1)
    # BN valid-window mask, precomputed outside the kernel.
    pos = jnp.arange(nhw, dtype=jnp.int32)
    mask = ((((pos // W) % H) < H2) & ((pos % W) < W2)).astype(jnp.float32)
    mask = mask.reshape(1, nhw)

    vmem = pl.BlockSpec(memory_space=pltpu.MemorySpace.VMEM)
    kernel = functools.partial(fused_conv_conv_bn_kernel,
                               W=W, n1=n1, inv_cnt=1.0 / float(N * H2 * W2))

    flops = 2 * K * K * C8 * n1 + 2 * K * K * C1 * C8 * nhw + 8 * C8 * nhw
    bytes_accessed = 4 * (x_flat.size + w1m.size + w2m.size + 2 * C8
                          + mask.size + C8 * nhw)

    out_full = pl.pallas_call(
        kernel,
        out_shape=jax.ShapeDtypeStruct((C8, nhw), jnp.float32),
        in_specs=[vmem] * 6,
        out_specs=vmem,
        cost_estimate=pl.CostEstimate(flops=flops, transcendentals=C8,
                                      bytes_accessed=bytes_accessed),
    )(x_flat, w1m, w2m, gamma_p, beta_p, mask)

    # (8, N*H*W) padded full grid -> (N, C2, H2, W2) valid window (wrapper-side).
    # out_full contains boundary-wrapped garbage outside the valid window and
    # zeros in padded channel rows; both are sliced away here.
    out = out_full[:C2].reshape(C2, N, H, W)[:, :, :H2, :W2]
    return jnp.transpose(out, (1, 0, 2, 3))


def ref_forward(x, w1, b1, w2, b2, gamma, beta, eps=EPS):
    """Pure-JAX reference (lax.conv) for correctness checking."""
    dn = ('NCHW', 'OIHW', 'NCHW')
    h1 = lax.conv_general_dilated(x, w1, (1, 1), 'VALID', dimension_numbers=dn,
                                  precision=lax.Precision.HIGHEST)
    h1 = h1 + b1[None, :, None, None]
    xo = lax.conv_general_dilated(h1, w2, (1, 1), 'VALID', dimension_numbers=dn,
                                  precision=lax.Precision.HIGHEST)
    xo = xo + b2[None, :, None, None]
    mean = xo.mean(axis=(0, 2, 3), keepdims=True)
    var = ((xo - mean) ** 2).mean(axis=(0, 2, 3), keepdims=True)
    return gamma[None, :, None, None] * (xo - mean) * lax.rsqrt(var + eps) + \
        beta[None, :, None, None]


if __name__ == "__main__":
    key = jax.random.PRNGKey(0)
    k1, k2, k3, k4, k5 = jax.random.split(key, 5)

    # NOTE: the original script feeds (2, 1, 4, 4), for which the second VALID
    # conv would yield a 0x0 output; 16x16 spatial keeps both convs well-defined
    # while preserving every module dimension.
    N, Cin, H, W = 2, 1, 16, 16
    C1, C2 = 3, 3

    x3 = jax.random.normal(k1, (N, Cin, H, W), dtype=jnp.float32)

    # PyTorch-style uniform(-1/sqrt(fan_in), +1/sqrt(fan_in)) init.
    lim1 = 1.0 / (Cin * K * K) ** 0.5
    w1 = jax.random.uniform(k2, (C1, Cin, K, K), jnp.float32, -lim1, lim1)
    b1 = jax.random.uniform(k3, (C1,), jnp.float32, -lim1, lim1)
    lim2 = 1.0 / (C1 * K * K) ** 0.5
    w2 = jax.random.uniform(k4, (C2, C1, K, K), jnp.float32, -lim2, lim2)
    b2 = jax.random.uniform(k5, (C2,), jnp.float32, -lim2, lim2)
    gamma = jnp.ones((C2,), jnp.float32)   # BatchNorm2d default weight
    beta = jnp.zeros((C2,), jnp.float32)   # BatchNorm2d default bias

    fwd = jax.jit(forward)
    y = fwd(x3, w1, b1, w2, b2, gamma, beta)
    jax.block_until_ready(y)

    y_ref = ref_forward(x3, w1, b1, w2, b2, gamma, beta)
    np.testing.assert_allclose(np.asarray(y), np.asarray(y_ref),
                               rtol=2e-4, atol=2e-5)

    print("KERNEL_OK")
</pallas_src>

<mosaic_0001>
module attributes {stable_mosaic.version = 11 : i64} {
  func.func @fused_conv_conv_bn_kernel(%arg0: memref<1x768xf32, #tpu.memory_space<vmem>>, %arg1: memref<8x9xf32, #tpu.memory_space<vmem>>, %arg2: memref<8x27xf32, #tpu.memory_space<vmem>>, %arg3: memref<8x1xf32, #tpu.memory_space<vmem>>, %arg4: memref<8x1xf32, #tpu.memory_space<vmem>>, %arg5: memref<1x512xf32, #tpu.memory_space<vmem>>, %arg6: memref<8x512xf32, #tpu.memory_space<vmem>>) attributes {dimension_semantics = [], scalar_prefetch = 0 : i64, scratch_operands = 0 : i64, tpu.core_type = #tpu.core_type<tc>} {
    %c0 = arith.constant 0 : index
    %c0_0 = arith.constant 0 : index
    %0 = vector.load %arg0[%c0, %c0_0] : memref<1x768xf32, #tpu.memory_space<vmem>>, vector<1x768xf32>
    %c0_1 = arith.constant 0 : index
    %c0_2 = arith.constant 0 : index
    %1 = vector.load %arg1[%c0_1, %c0_2] : memref<8x9xf32, #tpu.memory_space<vmem>>, vector<8x9xf32>
    %c0_3 = arith.constant 0 : index
    %c0_4 = arith.constant 0 : index
    %2 = vector.load %arg2[%c0_3, %c0_4] : memref<8x27xf32, #tpu.memory_space<vmem>>, vector<8x27xf32>
    %cst = arith.constant 0.000000e+00 : f32
    %3 = vector.broadcast %cst : f32 to vector<8x640xf32>
    %4 = vector.extract_strided_slice %1 {offsets = [0, 0], sizes = [8, 1], strides = [1, 1]} : vector<8x9xf32> to vector<8x1xf32>
    %5 = vector.extract_strided_slice %0 {offsets = [0, 0], sizes = [1, 640], strides = [1, 1]} : vector<1x768xf32> to vector<1x640xf32>
    %6 = vector.broadcast %4 : vector<8x1xf32> to vector<8x640xf32>
    %7 = vector.broadcast %5 : vector<1x640xf32> to vector<8x640xf32>
    %8 = arith.mulf %6, %7 : vector<8x640xf32>
    %9 = arith.addf %3, %8 : vector<8x640xf32>
    %10 = vector.extract_strided_slice %1 {offsets = [0, 1], sizes = [8, 1], strides = [1, 1]} : vector<8x9xf32> to vector<8x1xf32>
    %11 = vector.extract_strided_slice %0 {offsets = [0, 1], sizes = [1, 640], strides = [1, 1]} : vector<1x768xf32> to vector<1x640xf32>
    %12 = vector.broadcast %10 : vector<8x1xf32> to vector<8x640xf32>
    %13 = vector.broadcast %11 : vector<1x640xf32> to vector<8x640xf32>
    %14 = arith.mulf %12, %13 : vector<8x640xf32>
    %15 = arith.addf %9, %14 : vector<8x640xf32>
    %16 = vector.extract_strided_slice %1 {offsets = [0, 2], sizes = [8, 1], strides = [1, 1]} : vector<8x9xf32> to vector<8x1xf32>
    %17 = vector.extract_strided_slice %0 {offsets = [0, 2], sizes = [1, 640], strides = [1, 1]} : vector<1x768xf32> to vector<1x640xf32>
    %18 = vector.broadcast %16 : vector<8x1xf32> to vector<8x640xf32>
    %19 = vector.broadcast %17 : vector<1x640xf32> to vector<8x640xf32>
    %20 = arith.mulf %18, %19 : vector<8x640xf32>
    %21 = arith.addf %15, %20 : vector<8x640xf32>
    %22 = vector.extract_strided_slice %1 {offsets = [0, 3], sizes = [8, 1], strides = [1, 1]} : vector<8x9xf32> to vector<8x1xf32>
    %23 = vector.extract_strided_slice %0 {offsets = [0, 16], sizes = [1, 640], strides = [1, 1]} : vector<1x768xf32> to vector<1x640xf32>
    %24 = vector.broadcast %22 : vector<8x1xf32> to vector<8x640xf32>
    %25 = vector.broadcast %23 : vector<1x640xf32> to vector<8x640xf32>
    %26 = arith.mulf %24, %25 : vector<8x640xf32>
    %27 = arith.addf %21, %26 : vector<8x640xf32>
    %28 = vector.extract_strided_slice %1 {offsets = [0, 4], sizes = [8, 1], strides = [1, 1]} : vector<8x9xf32> to vector<8x1xf32>
    %29 = vector.extract_strided_slice %0 {offsets = [0, 17], sizes = [1, 640], strides = [1, 1]} : vector<1x768xf32> to vector<1x640xf32>
    %30 = vector.broadcast %28 : vector<8x1xf32> to vector<8x640xf32>
    %31 = vector.broadcast %29 : vector<1x640xf32> to vector<8x640xf32>
    %32 = arith.mulf %30, %31 : vector<8x640xf32>
    %33 = arith.addf %27, %32 : vector<8x640xf32>
    %34 = vector.extract_strided_slice %1 {offsets = [0, 5], sizes = [8, 1], strides = [1, 1]} : vector<8x9xf32> to vector<8x1xf32>
    %35 = vector.extract_strided_slice %0 {offsets = [0, 18], sizes = [1, 640], strides = [1, 1]} : vector<1x768xf32> to vector<1x640xf32>
    %36 = vector.broadcast %34 : vector<8x1xf32> to vector<8x640xf32>
    %37 = vector.broadcast %35 : vector<1x640xf32> to vector<8x640xf32>
    %38 = arith.mulf %36, %37 : vector<8x640xf32>
    %39 = arith.addf %33, %38 : vector<8x640xf32>
    %40 = vector.extract_strided_slice %1 {offsets = [0, 6], sizes = [8, 1], strides = [1, 1]} : vector<8x9xf32> to vector<8x1xf32>
    %41 = vector.extract_strided_slice %0 {offsets = [0, 32], sizes = [1, 640], strides = [1, 1]} : vector<1x768xf32> to vector<1x640xf32>
    %42 = vector.broadcast %40 : vector<8x1xf32> to vector<8x640xf32>
    %43 = vector.broadcast %41 : vector<1x640xf32> to vector<8x640xf32>
    %44 = arith.mulf %42, %43 : vector<8x640xf32>
    %45 = arith.addf %39, %44 : vector<8x640xf32>
    %46 = vector.extract_strided_slice %1 {offsets = [0, 7], sizes = [8, 1], strides = [1, 1]} : vector<8x9xf32> to vector<8x1xf32>
    %47 = vector.extract_strided_slice %0 {offsets = [0, 33], sizes = [1, 640], strides = [1, 1]} : vector<1x768xf32> to vector<1x640xf32>
    %48 = vector.broadcast %46 : vector<8x1xf32> to vector<8x640xf32>
    %49 = vector.broadcast %47 : vector<1x640xf32> to vector<8x640xf32>
    %50 = arith.mulf %48, %49 : vector<8x640xf32>
    %51 = arith.addf %45, %50 : vector<8x640xf32>
    %52 = vector.extract_strided_slice %1 {offsets = [0, 8], sizes = [8, 1], strides = [1, 1]} : vector<8x9xf32> to vector<8x1xf32>
    %53 = vector.extract_strided_slice %0 {offsets = [0, 34], sizes = [1, 640], strides = [1, 1]} : vector<1x768xf32> to vector<1x640xf32>
    %54 = vector.broadcast %52 : vector<8x1xf32> to vector<8x640xf32>
    %55 = vector.broadcast %53 : vector<1x640xf32> to vector<8x640xf32>
    %56 = arith.mulf %54, %55 : vector<8x640xf32>
    %57 = arith.addf %51, %56 : vector<8x640xf32>
    %cst_5 = arith.constant 0.000000e+00 : f32
    %58 = vector.broadcast %cst_5 : f32 to vector<8x512xf32>
    %59 = vector.extract_strided_slice %2 {offsets = [0, 0], sizes = [8, 1], strides = [1, 1]} : vector<8x27xf32> to vector<8x1xf32>
    %60 = vector.extract_strided_slice %57 {offsets = [0, 0], sizes = [1, 512], strides = [1, 1]} : vector<8x640xf32> to vector<1x512xf32>
    %61 = vector.broadcast %59 : vector<8x1xf32> to vector<8x512xf32>
    %62 = vector.broadcast %60 : vector<1x512xf32> to vector<8x512xf32>
    %63 = arith.mulf %61, %62 : vector<8x512xf32>
    %64 = arith.addf %58, %63 : vector<8x512xf32>
    %65 = vector.extract_strided_slice %2 {offsets = [0, 1], sizes = [8, 1], strides = [1, 1]} : vector<8x27xf32> to vector<8x1xf32>
    %66 = vector.extract_strided_slice %57 {offsets = [0, 1], sizes = [1, 512], strides = [1, 1]} : vector<8x640xf32> to vector<1x512xf32>
    %67 = vector.broadcast %65 : vector<8x1xf32> to vector<8x512xf32>
    %68 = vector.broadcast %66 : vector<1x512xf32> to vector<8x512xf32>
    %69 = arith.mulf %67, %68 : vector<8x512xf32>
    %70 = arith.addf %64, %69 : vector<8x512xf32>
    %71 = vector.extract_strided_slice %2 {offsets = [0, 2], sizes = [8, 1], strides = [1, 1]} : vector<8x27xf32> to vector<8x1xf32>
    %72 = vector.extract_strided_slice %57 {offsets = [0, 2], sizes = [1, 512], strides = [1, 1]} : vector<8x640xf32> to vector<1x512xf32>
    %73 = vector.broadcast %71 : vector<8x1xf32> to vector<8x512xf32>
    %74 = vector.broadcast %72 : vector<1x512xf32> to vector<8x512xf32>
    %75 = arith.mulf %73, %74 : vector<8x512xf32>
    %76 = arith.addf %70, %75 : vector<8x512xf32>
    %77 = vector.extract_strided_slice %2 {offsets = [0, 3], sizes = [8, 1], strides = [1, 1]} : vector<8x27xf32> to vector<8x1xf32>
    %78 = vector.extract_strided_slice %57 {offsets = [0, 16], sizes = [1, 512], strides = [1, 1]} : vector<8x640xf32> to vector<1x512xf32>
    %79 = vector.broadcast %77 : vector<8x1xf32> to vector<8x512xf32>
    %80 = vector.broadcast %78 : vector<1x512xf32> to vector<8x512xf32>
    %81 = arith.mulf %79, %80 : vector<8x512xf32>
    %82 = arith.addf %76, %81 : vector<8x512xf32>
    %83 = vector.extract_strided_slice %2 {offsets = [0, 4], sizes = [8, 1], strides = [1, 1]} : vector<8x27xf32> to vector<8x1xf32>
    %84 = vector.extract_strided_slice %57 {offsets = [0, 17], sizes = [1, 512], strides = [1, 1]} : vector<8x640xf32> to vector<1x512xf32>
    %85 = vector.broadcast %83 : vector<8x1xf32> to vector<8x512xf32>
    %86 = vector.broadcast %84 : vector<1x512xf32> to vector<8x512xf32>
    %87 = arith.mulf %85, %86 : vector<8x512xf32>
    %88 = arith.addf %82, %87 : vector<8x512xf32>
    %89 = vector.extract_strided_slice %2 {offsets = [0, 5], sizes = [8, 1], strides = [1, 1]} : vector<8x27xf32> to vector<8x1xf32>
    %90 = vector.extract_strided_slice %57 {offsets = [0, 18], sizes = [1, 512], strides = [1, 1]} : vector<8x640xf32> to vector<1x512xf32>
    %91 = vector.broadcast %89 : vector<8x1xf32> to vector<8x512xf32>
    %92 = vector.broadcast %90 : vector<1x512xf32> to vector<8x512xf32>
    %93 = arith.mulf %91, %92 : vector<8x512xf32>
    %94 = arith.addf %88, %93 : vector<8x512xf32>
    %95 = vector.extract_strided_slice %2 {offsets = [0, 6], sizes = [8, 1], strides = [1, 1]} : vector<8x27xf32> to vector<8x1xf32>
    %96 = vector.extract_strided_slice %57 {offsets = [0, 32], sizes = [1, 512], strides = [1, 1]} : vector<8x640xf32> to vector<1x512xf32>
    %97 = vector.broadcast %95 : vector<8x1xf32> to vector<8x512xf32>
    %98 = vector.broadcast %96 : vector<1x512xf32> to vector<8x512xf32>
    %99 = arith.mulf %97, %98 : vector<8x512xf32>
    %100 = arith.addf %94, %99 : vector<8x512xf32>
    %101 = vector.extract_strided_slice %2 {offsets = [0, 7], sizes = [8, 1], strides = [1, 1]} : vector<8x27xf32> to vector<8x1xf32>
    %102 = vector.extract_strided_slice %57 {offsets = [0, 33], sizes = [1, 512], strides = [1, 1]} : vector<8x640xf32> to vector<1x512xf32>
    %103 = vector.broadcast %101 : vector<8x1xf32> to vector<8x512xf32>
    %104 = vector.broadcast %102 : vector<1x512xf32> to vector<8x512xf32>
    %105 = arith.mulf %103, %104 : vector<8x512xf32>
    %106 = arith.addf %100, %105 : vector<8x512xf32>
    %107 = vector.extract_strided_slice %2 {offsets = [0, 8], sizes = [8, 1], strides = [1, 1]} : vector<8x27xf32> to vector<8x1xf32>
    %108 = vector.extract_strided_slice %57 {offsets = [0, 34], sizes = [1, 512], strides = [1, 1]} : vector<8x640xf32> to vector<1x512xf32>
    %109 = vector.broadcast %107 : vector<8x1xf32> to vector<8x512xf32>
    %110 = vector.broadcast %108 : vector<1x512xf32> to vector<8x512xf32>
    %111 = arith.mulf %109, %110 : vector<8x512xf32>
    %112 = arith.addf %106, %111 : vector<8x512xf32>
    %113 = vector.extract_strided_slice %2 {offsets = [0, 9], sizes = [8, 1], strides = [1, 1]} : vector<8x27xf32> to vector<8x1xf32>
    %114 = vector.extract_strided_slice %57 {offsets = [1, 0], sizes = [1, 512], strides = [1, 1]} : vector<8x640xf32> to vector<1x512xf32>
    %115 = vector.broadcast %113 : vector<8x1xf32> to vector<8x512xf32>
    %116 = vector.broadcast %114 : vector<1x512xf32> to vector<8x512xf32>
    %117 = arith.mulf %115, %116 : vector<8x512xf32>
    %118 = arith.addf %112, %117 : vector<8x512xf32>
    %119 = vector.extract_strided_slice %2 {offsets = [0, 10], sizes = [8, 1], strides = [1, 1]} : vector<8x27xf32> to vector<8x1xf32>
    %120 = vector.extract_strided_slice %57 {offsets = [1, 1], sizes = [1, 512], strides = [1, 1]} : vector<8x640xf32> to vector<1x512xf32>
    %121 = vector.broadcast %119 : vector<8x1xf32> to vector<8x512xf32>
    %122 = vector.broadcast %120 : vector<1x512xf32> to vector<8x512xf32>
    %123 = arith.mulf %121, %122 : vector<8x512xf32>
    %124 = arith.addf %118, %123 : vector<8x512xf32>
    %125 = vector.extract_strided_slice %2 {offsets = [0, 11], sizes = [8, 1], strides = [1, 1]} : vector<8x27xf32> to vector<8x1xf32>
    %126 = vector.extract_strided_slice %57 {offsets = [1, 2], sizes = [1, 512], strides = [1, 1]} : vector<8x640xf32> to vector<1x512xf32>
    %127 = vector.broadcast %125 : vector<8x1xf32> to vector<8x512xf32>
    %128 = vector.broadcast %126 : vector<1x512xf32> to vector<8x512xf32>
    %129 = arith.mulf %127, %128 : vector<8x512xf32>
    %130 = arith.addf %124, %129 : vector<8x512xf32>
    %131 = vector.extract_strided_slice %2 {offsets = [0, 12], sizes = [8, 1], strides = [1, 1]} : vector<8x27xf32> to vector<8x1xf32>
    %132 = vector.extract_strided_slice %57 {offsets = [1, 16], sizes = [1, 512], strides = [1, 1]} : vector<8x640xf32> to vector<1x512xf32>
    %133 = vector.broadcast %131 : vector<8x1xf32> to vector<8x512xf32>
    %134 = vector.broadcast %132 : vector<1x512xf32> to vector<8x512xf32>
    %135 = arith.mulf %133, %134 : vector<8x512xf32>
    %136 = arith.addf %130, %135 : vector<8x512xf32>
    %137 = vector.extract_strided_slice %2 {offsets = [0, 13], sizes = [8, 1], strides = [1, 1]} : vector<8x27xf32> to vector<8x1xf32>
    %138 = vector.extract_strided_slice %57 {offsets = [1, 17], sizes = [1, 512], strides = [1, 1]} : vector<8x640xf32> to vector<1x512xf32>
    %139 = vector.broadcast %137 : vector<8x1xf32> to vector<8x512xf32>
    %140 = vector.broadcast %138 : vector<1x512xf32> to vector<8x512xf32>
    %141 = arith.mulf %139, %140 : vector<8x512xf32>
    %142 = arith.addf %136, %141 : vector<8x512xf32>
    %143 = vector.extract_strided_slice %2 {offsets = [0, 14], sizes = [8, 1], strides = [1, 1]} : vector<8x27xf32> to vector<8x1xf32>
    %144 = vector.extract_strided_slice %57 {offsets = [1, 18], sizes = [1, 512], strides = [1, 1]} : vector<8x640xf32> to vector<1x512xf32>
    %145 = vector.broadcast %143 : vector<8x1xf32> to vector<8x512xf32>
    %146 = vector.broadcast %144 : vector<1x512xf32> to vector<8x512xf32>
    %147 = arith.mulf %145, %146 : vector<8x512xf32>
    %148 = arith.addf %142, %147 : vector<8x512xf32>
    %149 = vector.extract_strided_slice %2 {offsets = [0, 15], sizes = [8, 1], strides = [1, 1]} : vector<8x27xf32> to vector<8x1xf32>
    %150 = vector.extract_strided_slice %57 {offsets = [1, 32], sizes = [1, 512], strides = [1, 1]} : vector<8x640xf32> to vector<1x512xf32>
    %151 = vector.broadcast %149 : vector<8x1xf32> to vector<8x512xf32>
    %152 = vector.broadcast %150 : vector<1x512xf32> to vector<8x512xf32>
    %153 = arith.mulf %151, %152 : vector<8x512xf32>
    %154 = arith.addf %148, %153 : vector<8x512xf32>
    %155 = vector.extract_strided_slice %2 {offsets = [0, 16], sizes = [8, 1], strides = [1, 1]} : vector<8x27xf32> to vector<8x1xf32>
    %156 = vector.extract_strided_slice %57 {offsets = [1, 33], sizes = [1, 512], strides = [1, 1]} : vector<8x640xf32> to vector<1x512xf32>
    %157 = vector.broadcast %155 : vector<8x1xf32> to vector<8x512xf32>
    %158 = vector.broadcast %156 : vector<1x512xf32> to vector<8x512xf32>
    %159 = arith.mulf %157, %158 : vector<8x512xf32>
    %160 = arith.addf %154, %159 : vector<8x512xf32>
    %161 = vector.extract_strided_slice %2 {offsets = [0, 17], sizes = [8, 1], strides = [1, 1]} : vector<8x27xf32> to vector<8x1xf32>
    %162 = vector.extract_strided_slice %57 {offsets = [1, 34], sizes = [1, 512], strides = [1, 1]} : vector<8x640xf32> to vector<1x512xf32>
    %163 = vector.broadcast %161 : vector<8x1xf32> to vector<8x512xf32>
    %164 = vector.broadcast %162 : vector<1x512xf32> to vector<8x512xf32>
    %165 = arith.mulf %163, %164 : vector<8x512xf32>
    %166 = arith.addf %160, %165 : vector<8x512xf32>
    %167 = vector.extract_strided_slice %2 {offsets = [0, 18], sizes = [8, 1], strides = [1, 1]} : vector<8x27xf32> to vector<8x1xf32>
    %168 = vector.extract_strided_slice %57 {offsets = [2, 0], sizes = [1, 512], strides = [1, 1]} : vector<8x640xf32> to vector<1x512xf32>
    %169 = vector.broadcast %167 : vector<8x1xf32> to vector<8x512xf32>
    %170 = vector.broadcast %168 : vector<1x512xf32> to vector<8x512xf32>
    %171 = arith.mulf %169, %170 : vector<8x512xf32>
    %172 = arith.addf %166, %171 : vector<8x512xf32>
    %173 = vector.extract_strided_slice %2 {offsets = [0, 19], sizes = [8, 1], strides = [1, 1]} : vector<8x27xf32> to vector<8x1xf32>
    %174 = vector.extract_strided_slice %57 {offsets = [2, 1], sizes = [1, 512], strides = [1, 1]} : vector<8x640xf32> to vector<1x512xf32>
    %175 = vector.broadcast %173 : vector<8x1xf32> to vector<8x512xf32>
    %176 = vector.broadcast %174 : vector<1x512xf32> to vector<8x512xf32>
    %177 = arith.mulf %175, %176 : vector<8x512xf32>
    %178 = arith.addf %172, %177 : vector<8x512xf32>
    %179 = vector.extract_strided_slice %2 {offsets = [0, 20], sizes = [8, 1], strides = [1, 1]} : vector<8x27xf32> to vector<8x1xf32>
    %180 = vector.extract_strided_slice %57 {offsets = [2, 2], sizes = [1, 512], strides = [1, 1]} : vector<8x640xf32> to vector<1x512xf32>
    %181 = vector.broadcast %179 : vector<8x1xf32> to vector<8x512xf32>
    %182 = vector.broadcast %180 : vector<1x512xf32> to vector<8x512xf32>
    %183 = arith.mulf %181, %182 : vector<8x512xf32>
    %184 = arith.addf %178, %183 : vector<8x512xf32>
    %185 = vector.extract_strided_slice %2 {offsets = [0, 21], sizes = [8, 1], strides = [1, 1]} : vector<8x27xf32> to vector<8x1xf32>
    %186 = vector.extract_strided_slice %57 {offsets = [2, 16], sizes = [1, 512], strides = [1, 1]} : vector<8x640xf32> to vector<1x512xf32>
    %187 = vector.broadcast %185 : vector<8x1xf32> to vector<8x512xf32>
    %188 = vector.broadcast %186 : vector<1x512xf32> to vector<8x512xf32>
    %189 = arith.mulf %187, %188 : vector<8x512xf32>
    %190 = arith.addf %184, %189 : vector<8x512xf32>
    %191 = vector.extract_strided_slice %2 {offsets = [0, 22], sizes = [8, 1], strides = [1, 1]} : vector<8x27xf32> to vector<8x1xf32>
    %192 = vector.extract_strided_slice %57 {offsets = [2, 17], sizes = [1, 512], strides = [1, 1]} : vector<8x640xf32> to vector<1x512xf32>
    %193 = vector.broadcast %191 : vector<8x1xf32> to vector<8x512xf32>
    %194 = vector.broadcast %192 : vector<1x512xf32> to vector<8x512xf32>
    %195 = arith.mulf %193, %194 : vector<8x512xf32>
    %196 = arith.addf %190, %195 : vector<8x512xf32>
    %197 = vector.extract_strided_slice %2 {offsets = [0, 23], sizes = [8, 1], strides = [1, 1]} : vector<8x27xf32> to vector<8x1xf32>
    %198 = vector.extract_strided_slice %57 {offsets = [2, 18], sizes = [1, 512], strides = [1, 1]} : vector<8x640xf32> to vector<1x512xf32>
    %199 = vector.broadcast %197 : vector<8x1xf32> to vector<8x512xf32>
    %200 = vector.broadcast %198 : vector<1x512xf32> to vector<8x512xf32>
    %201 = arith.mulf %199, %200 : vector<8x512xf32>
    %202 = arith.addf %196, %201 : vector<8x512xf32>
    %203 = vector.extract_strided_slice %2 {offsets = [0, 24], sizes = [8, 1], strides = [1, 1]} : vector<8x27xf32> to vector<8x1xf32>
    %204 = vector.extract_strided_slice %57 {offsets = [2, 32], sizes = [1, 512], strides = [1, 1]} : vector<8x640xf32> to vector<1x512xf32>
    %205 = vector.broadcast %203 : vector<8x1xf32> to vector<8x512xf32>
    %206 = vector.broadcast %204 : vector<1x512xf32> to vector<8x512xf32>
    %207 = arith.mulf %205, %206 : vector<8x512xf32>
    %208 = arith.addf %202, %207 : vector<8x512xf32>
    %209 = vector.extract_strided_slice %2 {offsets = [0, 25], sizes = [8, 1], strides = [1, 1]} : vector<8x27xf32> to vector<8x1xf32>
    %210 = vector.extract_strided_slice %57 {offsets = [2, 33], sizes = [1, 512], strides = [1, 1]} : vector<8x640xf32> to vector<1x512xf32>
    %211 = vector.broadcast %209 : vector<8x1xf32> to vector<8x512xf32>
    %212 = vector.broadcast %210 : vector<1x512xf32> to vector<8x512xf32>
    %213 = arith.mulf %211, %212 : vector<8x512xf32>
    %214 = arith.addf %208, %213 : vector<8x512xf32>
    %215 = vector.extract_strided_slice %2 {offsets = [0, 26], sizes = [8, 1], strides = [1, 1]} : vector<8x27xf32> to vector<8x1xf32>
    %216 = vector.extract_strided_slice %57 {offsets = [2, 34], sizes = [1, 512], strides = [1, 1]} : vector<8x640xf32> to vector<1x512xf32>
    %217 = vector.broadcast %215 : vector<8x1xf32> to vector<8x512xf32>
    %218 = vector.broadcast %216 : vector<1x512xf32> to vector<8x512xf32>
    %219 = arith.mulf %217, %218 : vector<8x512xf32>
    %220 = arith.addf %214, %219 : vector<8x512xf32>
    %c0_6 = arith.constant 0 : index
    %c0_7 = arith.constant 0 : index
    %221 = vector.load %arg5[%c0_6, %c0_7] : memref<1x512xf32, #tpu.memory_space<vmem>>, vector<1x512xf32>
    %222 = vector.broadcast %221 : vector<1x512xf32> to vector<8x512xf32>
    %223 = arith.mulf %220, %222 : vector<8x512xf32>
    %cst_8 = arith.constant dense<0.000000e+00> : vector<8xf32>
    %224 = vector.multi_reduction <add>, %223, %cst_8 [1] : vector<8x512xf32> to vector<8xf32>
    %225 = vector.shape_cast %224 : vector<8xf32> to vector<8x1xf32>
    %cst_9 = arith.constant 0.00347222225 : f32
    %226 = vector.broadcast %cst_9 : f32 to vector<8x1xf32>
    %227 = arith.mulf %225, %226 : vector<8x1xf32>
    %228 = vector.broadcast %227 : vector<8x1xf32> to vector<8x512xf32>
    %229 = arith.subf %220, %228 : vector<8x512xf32>
    %230 = arith.mulf %229, %229 : vector<8x512xf32>
    %231 = vector.broadcast %221 : vector<1x512xf32> to vector<8x512xf32>
    %232 = arith.mulf %230, %231 : vector<8x512xf32>
    %cst_10 = arith.constant dense<0.000000e+00> : vector<8xf32>
    %233 = vector.multi_reduction <add>, %232, %cst_10 [1] : vector<8x512xf32> to vector<8xf32>
    %234 = vector.shape_cast %233 : vector<8xf32> to vector<8x1xf32>
    %cst_11 = arith.constant 0.00347222225 : f32
    %235 = vector.broadcast %cst_11 : f32 to vector<8x1xf32>
    %236 = arith.mulf %234, %235 : vector<8x1xf32>
    %c0_12 = arith.constant 0 : index
    %c0_13 = arith.constant 0 : index
    %237 = vector.load %arg3[%c0_12, %c0_13] : memref<8x1xf32, #tpu.memory_space<vmem>>, vector<8x1xf32>
    %cst_14 = arith.constant 9.99999974E-6 : f32
    %238 = vector.broadcast %cst_14 : f32 to vector<8x1xf32>
    %239 = arith.addf %236, %238 : vector<8x1xf32>
    %240 = math.rsqrt %239 : vector<8x1xf32>
    %241 = arith.mulf %237, %240 : vector<8x1xf32>
    %242 = vector.broadcast %241 : vector<8x1xf32> to vector<8x512xf32>
    %243 = arith.mulf %242, %229 : vector<8x512xf32>
    %c0_15 = arith.constant 0 : index
    %c0_16 = arith.constant 0 : index
    %244 = vector.load %arg4[%c0_15, %c0_16] : memref<8x1xf32, #tpu.memory_space<vmem>>, vector<8x1xf32>
    %245 = vector.broadcast %244 : vector<8x1xf32> to vector<8x512xf32>
    %246 = arith.addf %243, %245 : vector<8x512xf32>
    %c0_17 = arith.constant 0 : index
    %c0_18 = arith.constant 0 : index
    %247 = vector.load %arg6[%c0_17, %c0_18] : memref<8x512xf32, #tpu.memory_space<vmem>>, vector<8x512xf32>
    tpu.vector_store %arg6[%c0_17, %c0_18], %246 {strides = array<i32>} : memref<8x512xf32, #tpu.memory_space<vmem>>, vector<8x512xf32>,
    return
  }
}

</mosaic_0001>

<bundles_post_ra>
// kernel: forward.1
= control target key start
LH: loop header
LB: loop body
LE: loop exit
PB: predicated region body
PF: predicated region fallthrough
CT: control target
= control target key end

     0   :  { %v1537_v0 = vmov 0   ;;  %v1538_v2 = vmov 3   ;;  %v1539_v3 = vmov 8   ;;  %v1540_v4 = vmov 4   ;;  %s1546_s25 = smov 127   ;;  %s1548_s26 = smov 112   ;;  %s2655_s1 = inlined_call_operand.vmem [shape: f32[8,9], index: 1, kind: input, shape index: {}]   ;;  %s2656_s2 = inlined_call_operand.vmem [shape: f32[8,27], index: 2, kind: input, shape index: {}]   ;;  %s2657_s0 = inlined_call_operand.vmem [shape: f32[1,768], index: 0, kind: input, shape index: {}]   ;;  %s2658_s5 = inlined_call_operand.vmem [shape: f32[1,512], index: 5, kind: input, shape index: {}]   ;;  %s2659_s4 = inlined_call_operand.vmem [shape: f32[8,1], index: 4, kind: input, shape index: {}]   ;;  %s2660_s3 = inlined_call_operand.vmem [shape: f32[8,1], index: 3, kind: input, shape index: {}]   ;;  %s2661_s6 = inlined_call_operand.vmem [shape: f32[8,512], index: 6, kind: output, shape index: {}]  }
   0x1   :  { %1501 = vset.pattern.permute.xlu0 %v1537_v0  ;;  %v24_v1 = vld [vmem:[%s2655_s1] sm:$0xff]  ;;  %1502 = vset.pattern.permute.xlu1 %v1538_v2  ;;  %v1541_v5 = vmov 1   ;;  %v1542_v6 = vmov 6   ;;  %v1543_v8 = vmov 7   ;;  %v1544_v9 = vmov 2   ;;  %s1549_s27 = smov 111  }
   0x2   :  { %28 = vperm.xlu0 %1501, %v24_v1   ;;  %161 = vperm.xlu1 %1502, %v24_v1   ;;  %v1615_v7 = vld [vmem:[%s2656_s2] sm:$0xff]  ;;  %v1545_v10 = vmov 5   ;;  %v32_v11 = vlaneseq  ;;  %s1550_s28 = smov 110   ;;  %s1551_s29 = smov 96   ;;  %vm100_vm0 = vcmask 1039360   ;;  %vm144_vm1 = vcmask 1031168  }
   0x3   :  { %v23_v17 = vld [vmem:[%s2657_s0] sm:$0x3f]  ;;  %s1547_s0 = smov 126   ;;  %s1552_s30 = smov 95   ;;  %vm188_vm2 = vcmask 916480   ;;  %vm232_vm3 = vcmask 908288  }
   0x4   :  { %v1624_v13 = vshrl.u32 %v32_v11, 7  ;;  %s1553_s7 = smov 94   ;;  %vm276_vm4 = vcmask 900096   ;;  %vm320_vm5 = vcmask 785408   ;;  %vm364_vm6 = vcmask 777216  }
   0x5   :  { %vm408_vm7 = vcmask 769024  }
   0x6   :  { %1506 = vset.pattern.permute.xlu0 %v1539_v3  ;;  %1503 = vset.pattern.permute.xlu1 %v1540_v4  ;;  %2668 = vst [vmem:[#allocation2_spill] sm:$0xff] %v1624_v13  ;;  %v2662_v15 = vsub.s32 3, %v1624_v13  ;;  %v1630_v16 = vsub.s32 0, %v1624_v13  ;;  %v1643_v20 = vsub.s32 1, %v1624_v13  ;;  %v1653_v25 = vsub.s32 2, %v1624_v13 }
   0x7   :  { %381 = vperm.xlu0 %1506, %v24_v1   ;;  %205 = vperm.xlu1 %1503, %v24_v1   ;;  %v50_v29 = vsub.s32 4, %v1624_v13  ;;  %v73_v33 = vsub.s32 5, %v1624_v13 }
   0x8   :  { %2669 = vst [vmem:[#allocation3_spill] sm:$0xff] %v1630_v16  ;;  %v1637_v18 = vrot.slane %v23_v17, %v2662_v15  ;;  %v1640_v19 = vrot.slane %v23_v17, %v1630_v16  ;;  %2670 = vst [vmem:[#allocation4_spill] sm:$0xff] %v1643_v20  ;;  %v1650_v24 = vrot.slane %v23_v17, %v1643_v20 }
   0x9   :  { %2671 = vst [vmem:[#allocation5_spill] sm:$0xff] %v1653_v25  ;;  %v1660_v28 = vrot.slane %v23_v17, %v1653_v25  ;;  %v1667_v34 = vrot.slane %v23_v17, %v50_v29  ;;  %v1672_v37 = vrot.slane %v23_v17, %v73_v33 }
   0xb   :  { %1507 = vset.pattern.permute.xlu0 %v1541_v5  ;;  %1504 = vset.pattern.permute.xlu1 %v1542_v6 }
   0xc   :  { %68 = vperm.xlu0 %1507, %v24_v1   ;;  %293 = vperm.xlu1 %1504, %v24_v1  }
  0x10   :  { %454 = vperm.xlu0 %1507, %v1615_v7   ;;  %1505 = vset.pattern.permute.xlu1 %v1543_v8 }
  0x11   :  { %337 = vperm.xlu1 %1505, %v24_v1  }
  0x14   :  { %1508 = vset.pattern.permute.xlu0 %v1544_v9 }
  0x15   :  { %117 = vperm.xlu0 %1508, %v24_v1   ;;  %1511 = vset.pattern.permute.xlu1 %v1540_v4 }
  0x16   :  { %566 = vperm.xlu1 %1511, %v1615_v7  }
  0x19   :  { %494 = vperm.xlu0 %1508, %v1615_v7  }
  0x1a   :  { %1512 = vset.pattern.permute.xlu1 %v1542_v6 }
  0x1d   :  { %1509 = vset.pattern.permute.xlu0 %v1538_v2 }
  0x1e   :  { %530 = vperm.xlu0 %1509, %v1615_v7  }
  0x22   :  { %1510 = vset.pattern.permute.xlu0 %v1545_v10 }
  0x23   :  { %249 = vperm.xlu0 %1510, %v24_v1  }
  0x81   :  { %v1622_v12 = vpop.permute.xlu0 %28  ;;  %v162_v40 = vpop.permute.xlu1 %161 }
  0x82   :  { %v165_v42 = vmul.f32 %v162_v40, %v1650_v24  ;;  %v167_v43 = vmul.f32 %v162_v40, %v1637_v18  ;;  %v169_v45 = vmul.f32 %v162_v40, %v1672_v37  ;;  %v164_v49 = vmul.f32 %v162_v40, %v1640_v19 }
  0x83   :  { %v166_v53 = vmul.f32 %v162_v40, %v1660_v28  ;;  %v168_v55 = vmul.f32 %v162_v40, %v1667_v34  ;;  %v1557_v40 = vmov 22  }
  0x86   :  { %v1626_v14 = vpop.permute.xlu0 %381  ;;  %v206_v47 = vpop.permute.xlu1 %205 }
  0x87   :  { %v209_v50 = vmul.f32 %v206_v47, %v1650_v24  ;;  %v211_v52 = vmul.f32 %v206_v47, %v1637_v18  ;;  %v213_v54 = vmul.f32 %v206_v47, %v1672_v37  ;;  %v208_v57 = vmul.f32 %v206_v47, %v1640_v19 }
  0x88   :  { %v210_v60 = vmul.f32 %v206_v47, %v1660_v28  ;;  %v212_v63 = vmul.f32 %v206_v47, %v1667_v34 }
  0x8b   :  { %v69_v21 = vpop.permute.xlu0 %68  ;;  %v294_v61 = vpop.permute.xlu1 %293 }
  0x8c   :  { %v79_v22 = vmul.f32 %v69_v21, %v1637_v18  ;;  %v76_v23 = vmul.f32 %v69_v21, %v1640_v19  ;;  %v77_v27 = vmul.f32 %v69_v21, %v1650_v24  ;;  %v78_v31 = vmul.f32 %v69_v21, %v1660_v28 }
  0x8d   :  { %v80_v36 = vmul.f32 %v69_v21, %v1667_v34  ;;  %v81_v39 = vmul.f32 %v1672_v37, %v69_v21  ;;  %v296_v62 = vmul.f32 %v294_v61, %v1640_v19  ;;  %v298_v2 = vmul.f32 %v294_v61, %v1660_v28 }
  0x8e   :  { %94 = vrot.lane.b32.xlu0 %v79_v22, %s1546_s25  ;;  %88 = vrot.lane.b32.xlu1 %v76_v23, %s1546_s25  ;;  %v297_v11 = vmul.f32 %v294_v61, %v1650_v24  ;;  %v299_v21 = vmul.f32 %v294_v61, %v1637_v18  ;;  %v384_v22 = vmul.f32 %v1626_v14, %v1640_v19 }
  0x8f   :  { %v1655_v26 = vpop.permute.xlu0 %454  ;;  %v300_v23 = vmul.f32 %v294_v61, %v1667_v34 }
  0x90   :  { %v338_v5 = vpop.permute.xlu1 %337 }
  0x91   :  { %v340_v9 = vmul.f32 %v338_v5, %v1640_v19  ;;  %v342_v17 = vmul.f32 %v338_v5, %v1660_v28  ;;  %v341_v29 = vmul.f32 %v338_v5, %v1650_v24  ;;  %v344_v33 = vmul.f32 %v338_v5, %v1667_v34 }
  0x92   :  { %90 = vrot.lane.b32.xlu1 %v77_v27, %s1546_s25  ;;  %v386_v27 = vmul.f32 %v1626_v14, %v1660_v28 }
  0x94   :  { %v118_v30 = vpop.permute.xlu0 %117 }
  0x95   :  { %v121_v32 = vmul.f32 %v118_v30, %v1650_v24  ;;  %v123_v35 = vmul.f32 %v118_v30, %v1637_v18  ;;  %v125_v38 = vmul.f32 %v118_v30, %v1672_v37  ;;  %v120_v41 = vmul.f32 %v118_v30, %v1640_v19 }
  0x96   :  { %92 = vrot.lane.b32.xlu1 %v78_v31, %s1546_s25  ;;  %v122_v44 = vmul.f32 %v118_v30, %v1660_v28  ;;  %v124_v46 = vmul.f32 %v118_v30, %v1667_v34  ;;  %v343_v30 = vmul.f32 %v338_v5, %v1637_v18  ;;  %v301_v31 = vmul.f32 %v294_v61, %v1672_v37 }
  0x97   :  { %134 = vrot.lane.b32.xlu0 %v121_v32, %s1547_s0  ;;  %v1554_v32 = vmov 12   ;;  %v1563_v61 = vmov 14  }
  0x98   :  { %v1690_v48 = vpop.permute.xlu0 %494 }
  0x9a   :  { %96 = vrot.lane.b32.xlu1 %v80_v36, %s1546_s25  ;;  %v1555_v36 = vmov 15  }
  0x9b   :  { %138 = vrot.lane.b32.xlu0 %v123_v35, %s1547_s0  ;;  %v385_v35 = vmul.f32 %v1626_v14, %v1650_v24 }
  0x9d   :  { %v1697_v51 = vpop.permute.xlu0 %530 }
  0x9e   :  { %98 = vrot.lane.b32.xlu1 %v81_v39, %s1546_s25  ;;  %v345_v39 = vmul.f32 %v338_v5, %v1672_v37  ;;  %v1565_v5 = vmov 17  }
  0x9f   :  { %142 = vrot.lane.b32.xlu0 %v125_v38, %s1547_s0  ;;  %v1556_v38 = vmov 19  }
  0xa2   :  { %132 = vrot.lane.b32.xlu1 %v120_v41, %s1547_s0  ;;  %v250_v56 = vpop.permute.xlu0 %249  ;;  %v388_v41 = vmul.f32 %v1626_v14, %v1667_v34 }
  0xa3   :  { %178 = vrot.lane.b32.xlu0 %v165_v42, %s1548_s26  ;;  %v253_v58 = vmul.f32 %v250_v56, %v1650_v24  ;;  %v255_v59 = vmul.f32 %v250_v56, %v1637_v18  ;;  %v252_v1 = vmul.f32 %v250_v56, %v1640_v19  ;;  %v254_v4 = vmul.f32 %v250_v56, %v1660_v28  ;;  %v1772_v42 = vpop.permute.xlu1 %566 }
  0xa4   :  { %v257_v6 = vmul.f32 %v250_v56, %v1672_v37  ;;  %v256_v10 = vmul.f32 %v250_v56, %v1667_v34 }
  0xa6   :  { %136 = vrot.lane.b32.xlu1 %v122_v44, %s1547_s0  ;;  %v389_v44 = vmul.f32 %v1626_v14, %v1672_v37 }
  0xa7   :  { %182 = vrot.lane.b32.xlu0 %v167_v43, %s1548_s26  ;;  %v1558_v43 = vmov 25  }
  0xaa   :  { %140 = vrot.lane.b32.xlu1 %v124_v46, %s1547_s0  ;;  %v1559_v46 = vmov 9  }
  0xab   :  { %186 = vrot.lane.b32.xlu0 %v169_v45, %s1548_s26 }
  0xae   :  { %176 = vrot.lane.b32.xlu1 %v164_v49, %s1548_s26 }
  0xaf   :  { %222 = vrot.lane.b32.xlu0 %v209_v50, %s1549_s27  ;;  %v1560_v50 = vmov 10  }
  0xb2   :  { %180 = vrot.lane.b32.xlu1 %v166_v53, %s1548_s26 }
  0xb3   :  { %226 = vrot.lane.b32.xlu0 %v211_v52, %s1549_s27 }
  0xb6   :  { %184 = vrot.lane.b32.xlu1 %v168_v55, %s1548_s26 }
  0xb7   :  { %230 = vrot.lane.b32.xlu0 %v213_v54, %s1549_s27  ;;  %v1561_v54 = vmov 11  }
  0xba   :  { %220 = vrot.lane.b32.xlu1 %v208_v57, %s1549_s27 }
  0xbb   :  { %266 = vrot.lane.b32.xlu0 %v253_v58, %s1550_s28  ;;  %v1562_v58 = vmov 13  }
  0xbe   :  { %224 = vrot.lane.b32.xlu1 %v210_v60, %s1549_s27 }
  0xbf   :  { %270 = vrot.lane.b32.xlu0 %v255_v59, %s1550_s28 }
  0xc2   :  { %228 = vrot.lane.b32.xlu1 %v212_v63, %s1549_s27 }
  0xc3   :  { %308 = vrot.lane.b32.xlu0 %v296_v62, %s1551_s29 }
  0xc6   :  { %264 = vrot.lane.b32.xlu1 %v252_v1, %s1550_s28  ;;  %v1564_v1 = vmov 16  }
  0xc7   :  { %312 = vrot.lane.b32.xlu0 %v298_v2, %s1551_s29 }
  0xca   :  { %268 = vrot.lane.b32.xlu1 %v254_v4, %s1550_s28 }
  0xcb   :  { %274 = vrot.lane.b32.xlu0 %v257_v6, %s1550_s28 }
  0xce   :  { %272 = vrot.lane.b32.xlu1 %v256_v10, %s1550_s28 }
  0xcf   :  { %352 = vrot.lane.b32.xlu0 %v340_v9, %s1552_s30 }
  0xd2   :  { %310 = vrot.lane.b32.xlu1 %v297_v11, %s1551_s29  ;;  %v1566_v11 = vmov 20  }
  0xd3   :  { %356 = vrot.lane.b32.xlu0 %v342_v17, %s1552_s30 }
  0xd6   :  { %314 = vrot.lane.b32.xlu1 %v299_v21, %s1551_s29 }
  0xd7   :  { %396 = vrot.lane.b32.xlu0 %v384_v22, %s1553_s7  ;;  %v1567_v22 = vmov 21  }
  0xda   :  { %316 = vrot.lane.b32.xlu1 %v300_v23, %s1551_s29 }
  0xdb   :  { %400 = vrot.lane.b32.xlu0 %v386_v27, %s1553_s7 }
  0xde   :  { %354 = vrot.lane.b32.xlu1 %v341_v29, %s1552_s30  ;;  %v1568_v29 = vmov 23  }
  0xdf   :  { %602 = vperm.xlu0 %1510, %v1615_v7  }
  0xe2   :  { %358 = vrot.lane.b32.xlu1 %v343_v30, %s1552_s30 }
  0xe3   :  { %1514 = vset.pattern.permute.xlu0 %v1539_v3  ;;  %v387_v3 = vmul.f32 %v1626_v14, %v1637_v18 }
  0xe4   :  { %710 = vperm.xlu0 %1514, %v1615_v7  }
  0xe6   :  { %318 = vrot.lane.b32.xlu1 %v301_v31, %s1551_s29 }
  0xe8   :  { %1517 = vset.pattern.permute.xlu0 %v1554_v32  ;;  %v1569_v32 = vmov 24  }
  0xe9   :  { %850 = vperm.xlu0 %1517, %v1615_v7  }
  0xea   :  { %360 = vrot.lane.b32.xlu1 %v344_v33, %s1552_s30 }
  0xed   :  { %1520 = vset.pattern.permute.xlu0 %v1555_v36 }
  0xee   :  { %958 = vperm.xlu0 %1520, %v1615_v7   ;;  %398 = vrot.lane.b32.xlu1 %v385_v35, %s1553_s7 }
  0xf2   :  { %1523 = vset.pattern.permute.xlu0 %v1556_v38  ;;  %402 = vrot.lane.b32.xlu1 %v387_v3, %s1553_s7  ;;  %v1570_v3 = vmov 26  }
  0xf3   :  { %1094 = vperm.xlu0 %1523, %v1615_v7  }
  0xf6   :  { %362 = vrot.lane.b32.xlu1 %v345_v39, %s1552_s30 }
  0xf7   :  { %1526 = vset.pattern.permute.xlu0 %v1557_v40 }
  0xf8   :  { %1206 = vperm.xlu0 %1526, %v1615_v7  }
  0xfa   :  { %404 = vrot.lane.b32.xlu1 %v388_v41, %s1553_s7 }
  0xfc   :  { %1529 = vset.pattern.permute.xlu0 %v1558_v43 }
  0xfd   :  { %1314 = vperm.xlu0 %1529, %v1615_v7  }
  0xfe   :  { %406 = vrot.lane.b32.xlu1 %v389_v44, %s1553_s7 }
 0x100   :  { %v1778_v45 = vpop.permute.xlu1 %88  ;;  %v1784_v49 = vpop.permute.xlu0 %94 }
 0x101   :  { %1532 = vset.pattern.permute.xlu0 %v1559_v46 }
 0x102   :  { %746 = vperm.xlu0 %1532, %v1615_v7   ;;  %638 = vperm.xlu1 %1512, %v1615_v7  }
 0x104   :  { %v1782_v47 = vpop.permute.xlu1 %90 }
 0x106   :  { %1513 = vset.pattern.permute.xlu1 %v1543_v8 }
 0x107   :  { %674 = vperm.xlu1 %1513, %v1615_v7  }
 0x108   :  { %v1788_v14 = vpop.permute.xlu1 %92 }
 0x109   :  { %v1790_v37 = vpop.permute.xlu0 %134 }
 0x10b   :  { %1515 = vset.pattern.permute.xlu1 %v1560_v50 }
 0x10c   :  { %774 = vperm.xlu1 %1515, %v1615_v7   ;;  %v1793_v52 = vpop.permute.xlu1 %96 }
 0x10d   :  { %v1795_v53 = vpop.permute.xlu0 %138 }
 0x110   :  { %1516 = vset.pattern.permute.xlu1 %v1561_v54  ;;  %v1797_v55 = vpop.permute.xlu1 %98  ;;  %v101_v54 = vsel %vm100_vm0, %v1778_v45, %v1782_v47 }
 0x111   :  { %v1799_v56 = vpop.permute.xlu0 %142  ;;  %814 = vperm.xlu1 %1516, %v1615_v7  }
 0x114   :  { %v1802_v8 = vpop.permute.xlu1 %132 }
 0x115   :  { %v1804_v57 = vpop.permute.xlu0 %178  ;;  %1518 = vset.pattern.permute.xlu1 %v1562_v58  ;;  %v102_v58 = vsel %vm100_vm0, %v1782_v47, %v1788_v14 }
 0x116   :  { %886 = vperm.xlu1 %1518, %v1615_v7  }
 0x118   :  { %v1807_v59 = vpop.permute.xlu1 %136 }
 0x119   :  { %v1809_v60 = vpop.permute.xlu0 %182 }
 0x11a   :  { %1519 = vset.pattern.permute.xlu1 %v1563_v61  ;;  %v57_v61 = vmul.f32 %v1640_v19, %v1622_v12  ;;  %v103_v19 = vsel %vm100_vm0, %v1788_v14, %v1784_v49 }
 0x11b   :  { %922 = vperm.xlu1 %1519, %v1615_v7  }
 0x11c   :  { %v1812_v62 = vpop.permute.xlu1 %140  ;;  %v111_v45 = vadd.f32 %v101_v54, %v57_v61  ;;  %v147_v54 = vsel %vm144_vm1, %v1807_v59, %v1795_v53 }
 0x11d   :  { %v1814_v63 = vpop.permute.xlu0 %186 }
 0x11f   :  { %1521 = vset.pattern.permute.xlu1 %v1564_v1  ;;  %v58_v1 = vmul.f32 %v1650_v24, %v1622_v12 }
 0x120   :  { %994 = vperm.xlu1 %1521, %v1615_v7   ;;  %v177_v2 = vpop.permute.xlu1 %176 }
 0x121   :  { %v1817_v4 = vpop.permute.xlu0 %222  ;;  %v189_v24 = vsel %vm188_vm2, %v177_v2, %v1804_v57 }
 0x124   :  { %1522 = vset.pattern.permute.xlu1 %v1565_v5  ;;  %v1819_v6 = vpop.permute.xlu1 %180  ;;  %v145_v5 = vsel %vm144_vm1, %v1802_v8, %v1790_v37 }
 0x125   :  { %v1821_v9 = vpop.permute.xlu0 %226  ;;  %1030 = vperm.xlu1 %1522, %v1615_v7   ;;  %v190_v8 = vsel %vm188_vm2, %v1804_v57, %v1819_v6 }
 0x128   :  { %v1824_v10 = vpop.permute.xlu1 %184 }
 0x129   :  { %1524 = vset.pattern.permute.xlu1 %v1566_v11  ;;  %v1826_v17 = vpop.permute.xlu0 %230  ;;  %v146_v11 = vsel %vm144_vm1, %v1790_v37, %v1807_v59  ;;  %v59_v37 = vmul.f32 %v1660_v28, %v1622_v12  ;;  %v60_v28 = vmul.f32 %v1637_v18, %v1622_v12  ;;  %v191_v59 = vsel %vm188_vm2, %v1819_v6, %v1809_v60 }
 0x12a   :  { %1134 = vperm.xlu1 %1524, %v1615_v7  }
 0x12c   :  { %v221_v21 = vpop.permute.xlu1 %220 }
 0x12d   :  { %v267_v23 = vpop.permute.xlu0 %266  ;;  %v233_v14 = vsel %vm232_vm3, %v221_v21, %v1817_v4 }
 0x12e   :  { %1525 = vset.pattern.permute.xlu1 %v1567_v22  ;;  %v112_v22 = vadd.f32 %v102_v58, %v58_v1  ;;  %v113_v58 = vadd.f32 %v103_v19, %v59_v37  ;;  %v104_v19 = vsel %vm100_vm0, %v1784_v49, %v1793_v52 }
 0x12f   :  { %1170 = vperm.xlu1 %1525, %v1615_v7  }
 0x130   :  { %v1830_v27 = vpop.permute.xlu1 %224 }
 0x131   :  { %v1835_v31 = vpop.permute.xlu0 %270  ;;  %v234_v2 = vsel %vm232_vm3, %v1817_v4, %v1830_v27  ;;  %v235_v18 = vsel %vm232_vm3, %v1830_v27, %v1821_v9  ;;  %v114_v27 = vadd.f32 %v104_v19, %v60_v28 }
 0x133   :  { %1527 = vset.pattern.permute.xlu1 %v1568_v29 }
 0x134   :  { %1242 = vperm.xlu1 %1527, %v1615_v7   ;;  %v1833_v30 = vpop.permute.xlu1 %228 }
 0x135   :  { %v309_v35 = vpop.permute.xlu0 %308 }
 0x138   :  { %1528 = vset.pattern.permute.xlu1 %v1569_v32  ;;  %v265_v33 = vpop.permute.xlu1 %264  ;;  %v155_v32 = vadd.f32 %v145_v5, %v111_v45 }
 0x139   :  { %1278 = vperm.xlu1 %1528, %v1615_v7   ;;  %v1841_v39 = vpop.permute.xlu0 %312  ;;  %v277_v5 = vsel %vm276_vm4, %v265_v33, %v267_v23 }
 0x13a   :  { %v199_v61 = vadd.f32 %v189_v24, %v155_v32 }
 0x13c   :  { %v269_v36 = vpop.permute.xlu1 %268  ;;  %v243_v45 = vadd.f32 %v233_v14, %v199_v61 }
 0x13d   :  { %1530 = vset.pattern.permute.xlu1 %v1570_v3  ;;  %v1845_v41 = vpop.permute.xlu0 %274  ;;  %v156_v3 = vadd.f32 %v146_v11, %v112_v22  ;;  %v278_v21 = vsel %vm276_vm4, %v267_v23, %v269_v36  ;;  %v157_v11 = vadd.f32 %v147_v54, %v113_v58  ;;  %v61_v23 = vmul.f32 %v1667_v34, %v1622_v12 }
 0x13e   :  { %1350 = vperm.xlu1 %1530, %v1615_v7   ;;  %v105_v12 = vsel %vm100_vm0, %v1793_v52, %v1797_v55  ;;  %v148_v34 = vsel %vm144_vm1, %v1795_v53, %v1812_v62  ;;  %v192_v52 = vsel %vm188_vm2, %v1809_v60, %v1824_v10  ;;  %v236_v60 = vsel %vm232_vm3, %v1821_v9, %v1833_v30 }
 0x13f   :  { %v200_v57 = vadd.f32 %v190_v8, %v156_v3  ;;  %v201_v33 = vadd.f32 %v191_v59, %v157_v11  ;;  %v287_v8 = vadd.f32 %v277_v5, %v243_v45  ;;  %v279_v3 = vsel %vm276_vm4, %v269_v36, %v1835_v31 }
 0x140   :  { %v1839_v38 = vpop.permute.xlu1 %272  ;;  %v149_v36 = vsel %vm144_vm1, %v1812_v62, %v1799_v56  ;;  %v1571_v62 = vmov 18   ;;  %v158_v28 = vadd.f32 %v148_v34, %v114_v27 }
 0x141   :  { %v353_v46 = vpop.permute.xlu0 %352  ;;  %v244_v4 = vadd.f32 %v234_v2, %v200_v57  ;;  %1533 = vset.pattern.permute.xlu0 %v1571_v62  ;;  %v280_v9 = vsel %vm276_vm4, %v1835_v31, %v1839_v38 }
 0x142   :  { %1531 = vset.pattern.permute.xlu1 %v1537_v0  ;;  %v202_v11 = vadd.f32 %v192_v52, %v158_v28 }
 0x143   :  { %426 = vperm.xlu1 %1531, %v1615_v7   ;;  %v288_v37 = vadd.f32 %v278_v21, %v244_v4  ;;  %v115_v21 = vadd.f32 %v105_v12, %v61_v23 }
 0x144   :  { %v311_v40 = vpop.permute.xlu1 %310 }
 0x145   :  { %v357_v29 = vpop.permute.xlu0 %356  ;;  %v321_v24 = vsel %vm320_vm5, %v309_v35, %v311_v40  ;;  %v322_v6 = vsel %vm320_vm5, %v311_v40, %v1841_v39  ;;  %v245_v35 = vadd.f32 %v235_v18, %v201_v33  ;;  %v159_v19 = vadd.f32 %v149_v36, %v115_v21 }
 0x146   :  { %v331_v14 = vadd.f32 %v321_v24, %v287_v8  ;;  %v332_v2 = vadd.f32 %v322_v6, %v288_v37  ;;  %v193_v18 = vsel %vm188_vm2, %v1824_v10, %v1814_v63  ;;  %v246_v6 = vadd.f32 %v236_v60, %v202_v11 }
 0x147   :  { %v237_v37 = vsel %vm232_vm3, %v1833_v30, %v1826_v17  ;;  %v203_v10 = vadd.f32 %v193_v18, %v159_v19 }
 0x148   :  { %v1847_v43 = vpop.permute.xlu1 %314  ;;  %v290_v31 = vadd.f32 %v280_v9, %v246_v6 }
 0x149   :  { %v397_v22 = vpop.permute.xlu0 %396  ;;  %v323_v40 = vsel %vm320_vm5, %v1841_v39, %v1847_v43  ;;  %v247_v30 = vadd.f32 %v237_v37, %v203_v10 }
 0x14c   :  { %v1849_v44 = vpop.permute.xlu1 %316 }
 0x14d   :  { %v324_v63 = vsel %vm320_vm5, %v1847_v43, %v1849_v44 }
 0x14e   :  { %v334_v43 = vadd.f32 %v324_v63, %v290_v31 }
 0x150   :  { %v355_v50 = vpop.permute.xlu1 %354 }
 0x151   :  { %v365_v49 = vsel %vm364_vm6, %v353_v46, %v355_v50  ;;  %v366_v54 = vsel %vm364_vm6, %v355_v50, %v357_v29  ;;  %v289_v46 = vadd.f32 %v279_v3, %v245_v35  ;;  %v401_v50 = vpop.permute.xlu0 %400 }
 0x152   :  { %v375_v58 = vadd.f32 %v365_v49, %v331_v14  ;;  %v376_v61 = vadd.f32 %v366_v54, %v332_v2  ;;  %v281_v54 = vsel %vm276_vm4, %v1839_v38, %v1845_v41 }
 0x153   :  { %v333_v39 = vadd.f32 %v323_v40, %v289_v46  ;;  %v291_v14 = vadd.f32 %v281_v54, %v247_v30 }
 0x154   :  { %v1867_v47 = vpop.permute.xlu1 %358 }
 0x155   :  { %v367_v53 = vsel %vm364_vm6, %v357_v29, %v1867_v47 }
 0x156   :  { %v377_v45 = vadd.f32 %v367_v53, %v333_v39 }
 0x158   :  { %v1887_v1 = vpop.permute.xlu1 %318 }
 0x159   :  { %v325_v35 = vsel %vm320_vm5, %v1849_v44, %v1887_v1 }
 0x15a   :  { %v335_v41 = vadd.f32 %v325_v35, %v291_v14 }
 0x15c   :  { %v361_v32 = vpop.permute.xlu1 %360 }
 0x15d   :  { %v368_v17 = vsel %vm364_vm6, %v1867_v47, %v361_v32 }
 0x15e   :  { %v378_v2 = vadd.f32 %v368_v17, %v334_v43  ;;  %v603_v11 = vpop.permute.xlu0 %602 }
 0x160   :  { %v399_v57 = vpop.permute.xlu1 %398 }
 0x161   :  { %v409_v55 = vsel %vm408_vm7, %v397_v22, %v399_v57  ;;  %v410_v56 = vsel %vm408_vm7, %v399_v57, %v401_v50 }
 0x162   :  { %v1930_v59 = vadd.f32 %v409_v55, %v375_v58  ;;  %v1932_v5 = vadd.f32 %v410_v56, %v376_v61 }
 0x163   :  { %v711_v54 = vpop.permute.xlu0 %710 }
 0x164   :  { %v1939_v29 = vrot.slane %v1930_v59, %v1630_v16  ;;  %v1943_v4 = vrot.slane %v1932_v5, %v1630_v16  ;;  %v403_v22 = vpop.permute.xlu1 %402  ;;  %v2336_v15 = vrot.slane %v1932_v5, %v1653_v25 }
 0x165   :  { %v411_v24 = vsel %vm408_vm7, %v401_v50, %v403_v22 }
 0x166   :  { %v1952_v23 = vadd.f32 %v411_v24, %v377_v45  ;;  %v462_v33 = vmul.f32 %v1655_v26, %v1943_v4  ;;  %v461_v8 = vmul.f32 %v1655_v26, %v1939_v29  ;;  %v497_v36 = vmul.f32 %v1690_v48, %v1939_v29 }
 0x167   :  { %v498_v57 = vmul.f32 %v1690_v48, %v1943_v4  ;;  %v534_v55 = vmul.f32 %v1697_v51, %v1943_v4  ;;  %v533_v56 = vmul.f32 %v1697_v51, %v1939_v29  ;;  %v569_v28 = vmul.f32 %v1772_v42, %v1939_v29 }
 0x168   :  { %v1966_v3 = vrot.slane %v1952_v23, %v1630_v16  ;;  %473 = vrot.lane.b32.xlu1 %v462_v33, %s1546_s25  ;;  %v363_v49 = vpop.permute.xlu1 %362  ;;  %471 = vrot.lane.b32.xlu0 %v461_v8, %s1546_s25  ;;  %v570_v21 = vmul.f32 %v1772_v42, %v1943_v4  ;;  %v605_v18 = vmul.f32 %v603_v11, %v1939_v29 }
 0x169   :  { %v369_v34 = vsel %vm364_vm6, %v361_v32, %v363_v49  ;;  %v713_v30 = vmul.f32 %v711_v54, %v1939_v29 }
 0x16a   :  { %v463_v27 = vmul.f32 %v1655_v26, %v1966_v3  ;;  %v379_v40 = vadd.f32 %v369_v34, %v335_v41  ;;  %v499_v58 = vmul.f32 %v1690_v48, %v1966_v3  ;;  %v607_v6 = vmul.f32 %v603_v11, %v1966_v3 }
 0x16b   :  { %v715_v35 = vmul.f32 %v711_v54, %v1966_v3  ;;  %v2085_v34 = vrot.slane %v1930_v59, %v1643_v20 }
 0x16c   :  { %v405_v12 = vpop.permute.xlu1 %404  ;;  %475 = vrot.lane.b32.xlu0 %v463_v27, %s1546_s25 }
 0x16d   :  { %v412_v38 = vsel %vm408_vm7, %v403_v22, %v405_v12  ;;  %v606_v22 = vmul.f32 %v603_v11, %v1943_v4 }
 0x16e   :  { %v1983_v47 = vadd.f32 %v412_v38, %v378_v2 }
 0x170   :  { %v1989_v46 = vrot.slane %v1983_v47, %v1630_v16  ;;  %v407_v44 = vpop.permute.xlu1 %406  ;;  %507 = vrot.lane.b32.xlu0 %v497_v36, %s1547_s0  ;;  %v2094_v36 = vrot.slane %v1952_v23, %v1643_v20 }
 0x171   :  { %v413_v1 = vsel %vm408_vm7, %v405_v12, %v407_v44  ;;  %v714_v44 = vmul.f32 %v711_v54, %v1943_v4 }
 0x172   :  { %v1993_v50 = vadd.f32 %v413_v1, %v379_v40  ;;  %v464_v32 = vmul.f32 %v1655_v26, %v1989_v46  ;;  %v500_v52 = vmul.f32 %v1690_v48, %v1989_v46  ;;  %v536_v39 = vmul.f32 %v1697_v51, %v1989_v46 }
 0x173   :  { %v572_v60 = vmul.f32 %v1772_v42, %v1989_v46  ;;  %v608_v63 = vmul.f32 %v603_v11, %v1989_v46  ;;  %v716_v12 = vmul.f32 %v711_v54, %v1989_v46 }
 0x174   :  { %477 = vrot.lane.b32.xlu1 %v464_v32, %s1546_s25  ;;  %511 = vrot.lane.b32.xlu0 %v499_v58, %s1547_s0  ;;  %v2003_v61 = vrot.slane %v1993_v50, %v1630_v16  ;;  %v851_v32 = vpop.permute.xlu0 %850 }
 0x176   :  { %v465_v53 = vmul.f32 %v2003_v61, %v1655_v26  ;;  %v501_v62 = vmul.f32 %v1690_v48, %v2003_v61  ;;  %v535_v26 = vmul.f32 %v1697_v51, %v1966_v3  ;;  %v571_v48 = vmul.f32 %v1772_v42, %v1966_v3 }
 0x177   :  { %v537_v45 = vmul.f32 %v1697_v51, %v2003_v61  ;;  %v573_v33 = vmul.f32 %v1772_v42, %v2003_v61  ;;  %v609_v17 = vmul.f32 %v603_v11, %v2003_v61 }
 0x178   :  { %509 = vrot.lane.b32.xlu1 %v498_v57, %s1547_s0  ;;  %513 = vrot.lane.b32.xlu0 %v500_v52, %s1547_s0 }
 0x17c   :  { %479 = vrot.lane.b32.xlu1 %v465_v53, %s1546_s25  ;;  %545 = vrot.lane.b32.xlu0 %v534_v55, %s1548_s26  ;;  %v2111_v53 = vpop.permute.xlu0 %958  ;;  %v717_v55 = vmul.f32 %v711_v54, %v2003_v61 }
 0x180   :  { %543 = vrot.lane.b32.xlu1 %v533_v56, %s1548_s26  ;;  %515 = vrot.lane.b32.xlu0 %v501_v62, %s1547_s0  ;;  %v2117_v62 = vrot.slane %v1932_v5, %v1643_v20 }
 0x181   :  { %v639_v19 = vpop.permute.xlu1 %638 }
 0x182   :  { %v641_v9 = vmul.f32 %v639_v19, %v1939_v29  ;;  %v643_v51 = vmul.f32 %v639_v19, %v1966_v3  ;;  %v644_v8 = vmul.f32 %v639_v19, %v1989_v46  ;;  %v642_v49 = vmul.f32 %v639_v19, %v1943_v4 }
 0x183   :  { %v645_v42 = vmul.f32 %v639_v19, %v2003_v61  ;;  %v854_v11 = vmul.f32 %v851_v32, %v2117_v62 }
 0x184   :  { %547 = vrot.lane.b32.xlu1 %v535_v26, %s1548_s26  ;;  %579 = vrot.lane.b32.xlu0 %v569_v28, %s1549_s27  ;;  %v2121_v26 = vrot.slane %v1983_v47, %v1643_v20 }
 0x186   :  { %v675_v24 = vpop.permute.xlu1 %674  ;;  %v856_v54 = vmul.f32 %v851_v32, %v2121_v26 }
 0x187   :  { %v678_v10 = vmul.f32 %v675_v24, %v1943_v4  ;;  %v677_v27 = vmul.f32 %v675_v24, %v1939_v29  ;;  %v679_v2 = vmul.f32 %v675_v24, %v1966_v3  ;;  %v680_v38 = vmul.f32 %v675_v24, %v1989_v46 }
 0x188   :  { %549 = vrot.lane.b32.xlu1 %v536_v39, %s1548_s26  ;;  %583 = vrot.lane.b32.xlu0 %v571_v48, %s1549_s27  ;;  %v681_v57 = vmul.f32 %v675_v24, %v2003_v61  ;;  %v2130_v48 = vpop.permute.xlu0 %1094 }
 0x18b   :  { %v2057_v37 = vpop.permute.xlu1 %774 }
 0x18c   :  { %581 = vrot.lane.b32.xlu1 %v570_v21, %s1549_s27  ;;  %585 = vrot.lane.b32.xlu0 %v572_v60, %s1549_s27  ;;  %v781_v41 = vmul.f32 %v2057_v37, %v2085_v34  ;;  %v783_v1 = vmul.f32 %v2057_v37, %v2094_v36  ;;  %v782_v39 = vmul.f32 %v2057_v37, %v2117_v62 }
 0x18d   :  { %v784_v60 = vmul.f32 %v2057_v37, %v2121_v26 }
 0x190   :  { %551 = vrot.lane.b32.xlu1 %v537_v45, %s1548_s26  ;;  %617 = vrot.lane.b32.xlu0 %v606_v22, %s1550_s28  ;;  %v815_v31 = vpop.permute.xlu1 %814  ;;  %v2141_v45 = vrot.slane %v1993_v50, %v1643_v20  ;;  %v2145_v22 = vpop.permute.xlu0 %1206 }
 0x191   :  { %v817_v52 = vmul.f32 %v815_v31, %v2085_v34  ;;  %v819_v56 = vmul.f32 %v815_v31, %v2094_v36  ;;  %v820_v61 = vmul.f32 %v815_v31, %v2121_v26  ;;  %v818_v19 = vmul.f32 %v815_v31, %v2117_v62 }
 0x192   :  { %v785_v24 = vmul.f32 %v2141_v45, %v2057_v37 }
 0x194   :  { %615 = vrot.lane.b32.xlu1 %v605_v18, %s1550_s28  ;;  %651 = vrot.lane.b32.xlu0 %v641_v9, %s1551_s29  ;;  %v821_v18 = vmul.f32 %v815_v31, %v2141_v45 }
 0x195   :  { %v2071_v43 = vpop.permute.xlu1 %886 }
 0x196   :  { %v892_v31 = vmul.f32 %v2071_v43, %v2121_v26 }
 0x198   :  { %619 = vrot.lane.b32.xlu1 %v607_v6, %s1550_s28  ;;  %655 = vrot.lane.b32.xlu0 %v643_v51, %s1551_s29  ;;  %v889_v6 = vmul.f32 %v2071_v43, %v2085_v34  ;;  %v2157_v51 = vpop.permute.xlu0 %1314 }
 0x19a   :  { %v2079_v14 = vpop.permute.xlu1 %922 }
 0x19c   :  { %587 = vrot.lane.b32.xlu1 %v573_v33, %s1549_s27  ;;  %657 = vrot.lane.b32.xlu0 %v644_v8, %s1551_s29  ;;  %v853_v8 = vmul.f32 %v851_v32, %v2085_v34  ;;  %v2168_v37 = vpop.permute.xlu0 %746 }
 0x19f   :  { %v2096_v40 = vpop.permute.xlu1 %994 }
 0x1a0   :  { %621 = vrot.lane.b32.xlu1 %v608_v63, %s1550_s28  ;;  %689 = vrot.lane.b32.xlu0 %v678_v10, %s1552_s30  ;;  %v891_v63 = vmul.f32 %v2071_v43, %v2094_v36  ;;  %v855_v10 = vmul.f32 %v851_v32, %v2094_v36 }
 0x1a4   :  { %653 = vrot.lane.b32.xlu1 %v642_v49, %s1551_s29  ;;  %659 = vrot.lane.b32.xlu0 %v645_v42, %s1551_s29  ;;  %v2105_v58 = vpop.permute.xlu1 %1030 }
 0x1a8   :  { %623 = vrot.lane.b32.xlu1 %v609_v17, %s1550_s28  ;;  %723 = vrot.lane.b32.xlu0 %v713_v30, %s1553_s7  ;;  %v926_v17 = vmul.f32 %v2079_v14, %v2117_v62 }
 0x1a9   :  { %v2123_v28 = vpop.permute.xlu1 %1134 }
 0x1ac   :  { %687 = vrot.lane.b32.xlu1 %v677_v27, %s1552_s30  ;;  %727 = vrot.lane.b32.xlu0 %v715_v35, %s1553_s7  ;;  %v890_v35 = vmul.f32 %v2071_v43, %v2117_v62 }
 0x1ae   :  { %v2134_v21 = vpop.permute.xlu1 %1170 }
 0x1af   :  { %v1174_v5 = vmul.f32 %v2134_v21, %v2336_v15 }
 0x1b0   :  { %691 = vrot.lane.b32.xlu1 %v679_v2, %s1552_s30  ;;  %729 = vrot.lane.b32.xlu0 %v716_v12, %s1553_s7 }
 0x1b3   :  { %v2149_v9 = vpop.permute.xlu1 %1242 }
 0x1b4   :  { %693 = vrot.lane.b32.xlu1 %v680_v38, %s1552_s30  ;;  %791 = vrot.lane.b32.xlu0 %v781_v41, %s1546_s25  ;;  %v857_v38 = vmul.f32 %v851_v32, %v2141_v45  ;;  %v961_v41 = vmul.f32 %v2111_v53, %v2085_v34 }
 0x1b8   :  { %725 = vrot.lane.b32.xlu1 %v714_v44, %s1553_s7  ;;  %795 = vrot.lane.b32.xlu0 %v783_v1, %s1546_s25  ;;  %v2161_v33 = vpop.permute.xlu1 %1278 }
 0x1bc   :  { %695 = vrot.lane.b32.xlu1 %v681_v57, %s1552_s30  ;;  %827 = vrot.lane.b32.xlu0 %v817_v52, %s1547_s0  ;;  %v963_v57 = vmul.f32 %v2111_v53, %v2094_v36 }
 0x1bd   :  { %v2173_v49 = vpop.permute.xlu1 %1350 }
 0x1be   :  { %2672 = vst [vmem:[#allocation6_spill] sm:$0xff] %v2173_v49 }
 0x1c0   :  { %731 = vrot.lane.b32.xlu1 %v717_v55, %s1553_s7  ;;  %831 = vrot.lane.b32.xlu0 %v819_v56, %s1547_s0  ;;  %v964_v55 = vmul.f32 %v2111_v53, %v2121_v26 }
 0x1c2   :  { %v2184_v30 = vpop.permute.xlu1 %426 }
 0x1c3   :  { %v447_v16 = vmul.f32 %v1966_v3, %v2184_v30 }
 0x1c4   :  { %793 = vrot.lane.b32.xlu1 %v782_v39, %s1546_s25  ;;  %833 = vrot.lane.b32.xlu0 %v820_v61, %s1547_s0  ;;  %v893_v61 = vmul.f32 %v2071_v43, %v2141_v45 }
 0x1c8   :  { %797 = vrot.lane.b32.xlu1 %v784_v60, %s1546_s25  ;;  %865 = vrot.lane.b32.xlu0 %v854_v11, %s1548_s26  ;;  %v998_v60 = vmul.f32 %v2096_v40, %v2117_v62 }
 0x1cc   :  { %829 = vrot.lane.b32.xlu1 %v818_v19, %s1547_s0  ;;  %835 = vrot.lane.b32.xlu0 %v821_v18, %s1547_s0  ;;  %v928_v18 = vmul.f32 %v2079_v14, %v2121_v26 }
 0x1d0   :  { %799 = vrot.lane.b32.xlu1 %v785_v24, %s1546_s25  ;;  %899 = vrot.lane.b32.xlu0 %v889_v6, %s1549_s27  ;;  %v965_v24 = vmul.f32 %v2111_v53, %v2141_v45 }
 0x1d4   :  { %863 = vrot.lane.b32.xlu1 %v853_v8, %s1548_s26  ;;  %903 = vrot.lane.b32.xlu0 %v891_v63, %s1549_s27  ;;  %v962_v8 = vmul.f32 %v2111_v53, %v2117_v62  ;;  %v1033_v63 = vmul.f32 %v2105_v58, %v2085_v34 }
 0x1d8   :  { %867 = vrot.lane.b32.xlu1 %v855_v10, %s1548_s26  ;;  %905 = vrot.lane.b32.xlu0 %v892_v31, %s1549_s27 }
 0x1da   :  { %v2177_v42 = vpop.permute.xlu0 %471  ;;  %v2192_v2 = vpop.permute.xlu1 %473 }
 0x1dc   :  { %869 = vrot.lane.b32.xlu1 %v856_v54, %s1548_s26  ;;  %937 = vrot.lane.b32.xlu0 %v926_v17, %s1550_s28  ;;  %v929_v54 = vmul.f32 %v2079_v14, %v2141_v45  ;;  %v1035_v17 = vmul.f32 %v2105_v58, %v2094_v36 }
 0x1de   :  { %v2186_v27 = vpop.permute.xlu0 %475 }
 0x1e0   :  { %901 = vrot.lane.b32.xlu1 %v890_v35, %s1549_s27  ;;  %1066 = vperm.xlu0 %1533, %v1615_v7   ;;  %v925_v7 = vmul.f32 %v2079_v14, %v2085_v34 }
 0x1e2   :  { %v2194_v12 = vpop.permute.xlu0 %507 }
 0x1e4   :  { %871 = vrot.lane.b32.xlu1 %v857_v38, %s1548_s26  ;;  %971 = vrot.lane.b32.xlu0 %v961_v41, %s1551_s29  ;;  %v997_v38 = vmul.f32 %v2096_v40, %v2085_v34  ;;  %v1036_v41 = vmul.f32 %v2105_v58, %v2121_v26 }
 0x1e5   :  { %1534 = vset.pattern.permute.xlu0 %v1537_v0  ;;  %v927_v0 = vmul.f32 %v2079_v14, %v2094_v36  ;;  %v2272_v14 = vrot.slane %v1930_v59, %v1653_v25 }
 0x1e6   :  { %v2202_v44 = vpop.permute.xlu1 %477  ;;  %v2204_v1 = vpop.permute.xlu0 %511 }
 0x1e8   :  { %935 = vrot.lane.b32.xlu1 %v925_v7, %s1550_s28  ;;  %975 = vrot.lane.b32.xlu0 %v963_v57, %s1551_s29 }
 0x1ea   :  { %v2212_v32 = vpop.permute.xlu1 %509  ;;  %v2214_v52 = vpop.permute.xlu0 %513 }
 0x1ec   :  { %939 = vrot.lane.b32.xlu1 %v927_v0, %s1550_s28  ;;  %977 = vrot.lane.b32.xlu0 %v964_v55, %s1551_s29  ;;  %v999_v0 = vmul.f32 %v2096_v40, %v2094_v36  ;;  %v1101_v55 = vmul.f32 %v2130_v48, %v2272_v14 }
 0x1ee   :  { %v2222_v56 = vpop.permute.xlu1 %479  ;;  %v2224_v39 = vpop.permute.xlu0 %545 }
 0x1f0   :  { %907 = vrot.lane.b32.xlu1 %v893_v61, %s1549_s27  ;;  %1009 = vrot.lane.b32.xlu0 %v998_v60, %s1552_s30  ;;  %v2286_v61 = vrot.slane %v1952_v23, %v1653_v25 }
 0x1f2   :  { %v2232_v11 = vpop.permute.xlu1 %543  ;;  %v2234_v19 = vpop.permute.xlu0 %515 }
 0x1f4   :  { %941 = vrot.lane.b32.xlu1 %v928_v18, %s1550_s28  ;;  %979 = vrot.lane.b32.xlu0 %v965_v24, %s1551_s29  ;;  %v1000_v18 = vmul.f32 %v2096_v40, %v2121_v26  ;;  %v1103_v24 = vmul.f32 %v2130_v48, %v2286_v61 }
 0x1f6   :  { %v2242_v43 = vpop.permute.xlu1 %547  ;;  %v2244_v6 = vpop.permute.xlu0 %579 }
 0x1f8   :  { %973 = vrot.lane.b32.xlu1 %v962_v8, %s1551_s29  ;;  %1043 = vrot.lane.b32.xlu0 %v1033_v63, %s1553_s7  ;;  %v1034_v63 = vmul.f32 %v2105_v58, %v2117_v62 }
 0x1fa   :  { %v2252_v10 = vpop.permute.xlu1 %549  ;;  %v2254_v31 = vpop.permute.xlu0 %583 }
 0x1fc   :  { %943 = vrot.lane.b32.xlu1 %v929_v54, %s1550_s28  ;;  %1047 = vrot.lane.b32.xlu0 %v1035_v17, %s1553_s7  ;;  %v1137_v54 = vmul.f32 %v2123_v28, %v2272_v14 }
 0x1fe   :  { %v2262_v53 = vpop.permute.xlu1 %581  ;;  %v2264_v35 = vpop.permute.xlu0 %585 }
 0x200   :  { %1007 = vrot.lane.b32.xlu1 %v997_v38, %s1552_s30  ;;  %1049 = vrot.lane.b32.xlu0 %v1036_v41, %s1553_s7  ;;  %v1001_v41 = vmul.f32 %v2096_v40, %v2141_v45  ;;  %v1037_v40 = vmul.f32 %v2105_v58, %v2141_v45  ;;  %v1102_v45 = vmul.f32 %v2130_v48, %v2336_v15 }
 0x202   :  { %v2276_v7 = vpop.permute.xlu1 %551  ;;  %v2278_v57 = vpop.permute.xlu0 %617 }
 0x204   :  { %1011 = vrot.lane.b32.xlu1 %v999_v0, %s1552_s30  ;;  %1111 = vrot.lane.b32.xlu0 %v1101_v55, %s1546_s25  ;;  %v1139_v0 = vmul.f32 %v2123_v28, %v2286_v61 }
 0x206   :  { %v2290_v59 = vpop.permute.xlu1 %615  ;;  %v2292_v60 = vpop.permute.xlu0 %651 }
 0x208   :  { %1013 = vrot.lane.b32.xlu1 %v1000_v18, %s1552_s30  ;;  %1115 = vrot.lane.b32.xlu0 %v1103_v24, %s1546_s25  ;;  %v2322_v18 = vrot.slane %v1983_v47, %v1653_v25  ;;  %v482_v47 = vsel %vm100_vm0, %v2192_v2, %v2186_v27 }
 0x20a   :  { %v2300_v23 = vpop.permute.xlu1 %619  ;;  %v2302_v8 = vpop.permute.xlu0 %655 }
 0x20c   :  { %1045 = vrot.lane.b32.xlu1 %v1034_v63, %s1553_s7  ;;  %1147 = vrot.lane.b32.xlu0 %v1137_v54, %s1547_s0  ;;  %v1140_v54 = vmul.f32 %v2123_v28, %v2322_v18 }
 0x20e   :  { %v2310_v17 = vpop.permute.xlu1 %587  ;;  %v658_v38 = vpop.permute.xlu0 %657 }
 0x20f   :  { %v2318_v55 = vsel %vm320_vm5, %v2302_v8, %v658_v38 }
 0x210   :  { %1015 = vrot.lane.b32.xlu1 %v1001_v41, %s1552_s30  ;;  %1151 = vrot.lane.b32.xlu0 %v1139_v0, %s1547_s0  ;;  %v446_v41 = vmul.f32 %v1943_v4, %v2184_v30  ;;  %v2362_v4 = vrot.slane %v1993_v50, %v1653_v25  ;;  %v1104_v50 = vmul.f32 %v2130_v48, %v2322_v18 }
 0x212   :  { %v2326_v24 = vpop.permute.xlu1 %621  ;;  %v2328_v63 = vpop.permute.xlu0 %689  ;;  %v490_v20 = vadd.f32 %v482_v47, %v446_v41  ;;  %v1141_v3 = vmul.f32 %v2123_v28, %v2362_v4 }
 0x214   :  { %1051 = vrot.lane.b32.xlu1 %v1037_v40, %s1553_s7  ;;  %1153 = vrot.lane.b32.xlu0 %v1140_v54, %s1547_s0  ;;  %v483_v40 = vsel %vm100_vm0, %v2186_v27, %v2202_v44  ;;  %v518_v54 = vsel %vm144_vm1, %v2212_v32, %v2204_v1  ;;  %v519_v27 = vsel %vm144_vm1, %v2204_v1, %v2214_v52 }
 0x215   :  { %v526_v47 = vadd.f32 %v518_v54, %v490_v20  ;;  %v481_v1 = vsel %vm100_vm0, %v2177_v42, %v2192_v2  ;;  %v1138_v20 = vmul.f32 %v2123_v28, %v2336_v15  ;;  %v517_v42 = vsel %vm144_vm1, %v2194_v12, %v2212_v32 }
 0x216   :  { %v2345_v0 = vpop.permute.xlu1 %653  ;;  %v660_v58 = vpop.permute.xlu0 %659  ;;  %v448_v2 = vmul.f32 %v1989_v46, %v2184_v30  ;;  %v591_v28 = vsel %vm232_vm3, %v2254_v31, %v2264_v35  ;;  %v553_v46 = vsel %vm188_vm2, %v2232_v11, %v2224_v39  ;;  %v589_v11 = vsel %vm232_vm3, %v2244_v6, %v2262_v53 }
 0x217   :  { %v2358_v13 = vsel %vm320_vm5, %v658_v38, %v660_v58  ;;  %v554_v38 = vsel %vm188_vm2, %v2224_v39, %v2242_v43  ;;  %v491_v58 = vadd.f32 %v483_v40, %v447_v16  ;;  %v590_v16 = vsel %vm232_vm3, %v2262_v53, %v2254_v31 }
 0x218   :  { %1113 = vrot.lane.b32.xlu1 %v1102_v45, %s1546_s25  ;;  %1185 = vrot.lane.b32.xlu0 %v1174_v5, %s1548_s26  ;;  %v1209_v45 = vmul.f32 %v2145_v22, %v2272_v14  ;;  %v555_v5 = vsel %vm188_vm2, %v2242_v43, %v2252_v10  ;;  %v445_v40 = vmul.f32 %v1939_v29, %v2184_v30 }
 0x219   :  { %v527_v54 = vadd.f32 %v519_v27, %v491_v58  ;;  %v562_v49 = vadd.f32 %v554_v38, %v526_v47  ;;  %v626_v29 = vsel %vm276_vm4, %v2278_v57, %v2300_v23  ;;  %v484_v27 = vsel %vm100_vm0, %v2202_v44, %v2222_v56 }
 0x21a   :  { %v624_v41 = vpop.permute.xlu1 %623  ;;  %v2376_v25 = vpop.permute.xlu0 %723  ;;  %v489_v43 = vadd.f32 %v481_v1, %v445_v40  ;;  %v627_v30 = vsel %vm276_vm4, %v2300_v23, %v2326_v24  ;;  %v662_v32 = vsel %vm320_vm5, %v2345_v0, %v2302_v8  ;;  %v520_v39 = vsel %vm144_vm1, %v2214_v52, %v2234_v19 }
 0x21b   :  { %v563_v38 = vadd.f32 %v555_v5, %v527_v54  ;;  %v1105_v23 = vmul.f32 %v2362_v4, %v2130_v48  ;;  %v1211_v8 = vmul.f32 %v2145_v22, %v2286_v61  ;;  %v492_v47 = vadd.f32 %v484_v27, %v448_v2 }
 0x21c   :  { %1117 = vrot.lane.b32.xlu1 %v1104_v50, %s1546_s25  ;;  %1155 = vrot.lane.b32.xlu0 %v1141_v3, %s1547_s0  ;;  %v598_v50 = vadd.f32 %v590_v16, %v562_v49  ;;  %v525_v44 = vadd.f32 %v517_v42, %v489_v43  ;;  %v556_v52 = vsel %vm188_vm2, %v2252_v10, %v2276_v7 }
 0x21d   :  { %v599_v56 = vadd.f32 %v591_v28, %v563_v38  ;;  %v625_v19 = vsel %vm276_vm4, %v2290_v59, %v2278_v57  ;;  %v528_v53 = vadd.f32 %v520_v39, %v492_v47  ;;  %v592_v10 = vsel %vm232_vm3, %v2264_v35, %v2310_v17 }
 0x21e   :  { %v688_v58 = vpop.permute.xlu1 %687  ;;  %v728_v12 = vpop.permute.xlu0 %727  ;;  %v634_v49 = vadd.f32 %v626_v29, %v598_v50  ;;  %v561_v3 = vadd.f32 %v553_v46, %v525_v44  ;;  %v661_v7 = vsel %vm320_vm5, %v2292_v60, %v2345_v0  ;;  %v1212_v57 = vmul.f32 %v2145_v22, %v2322_v18 }
 0x21f   :  { %v697_v31 = vsel %vm364_vm6, %v688_v58, %v2328_v63  ;;  %v635_v1 = vadd.f32 %v627_v30, %v599_v56  ;;  %v564_v59 = vadd.f32 %v556_v52, %v528_v53  ;;  %v1173_v28 = vmul.f32 %v2134_v21, %v2272_v14 }
 0x220   :  { %1149 = vrot.lane.b32.xlu1 %v1138_v20, %s1547_s0  ;;  %1219 = vrot.lane.b32.xlu0 %v1209_v45, %s1549_s27  ;;  %v670_v5 = vadd.f32 %v662_v32, %v634_v49  ;;  %v597_v20 = vadd.f32 %v589_v11, %v561_v3  ;;  %v628_v29 = vsel %vm276_vm4, %v2326_v24, %v624_v41 }
 0x221   :  { %v671_v42 = vadd.f32 %v2318_v55, %v635_v1  ;;  %v600_v17 = vadd.f32 %v592_v10, %v564_v59  ;;  %v1175_v0 = vmul.f32 %v2134_v21, %v2286_v61  ;;  %v767_v55 = vmul.f32 %v2094_v36, %v2168_v37 }
 0x222   :  { %v692_v16 = vpop.permute.xlu1 %691  ;;  %v730_v45 = vpop.permute.xlu0 %729  ;;  %v1246_v41 = vmul.f32 %v2149_v9, %v2336_v15  ;;  %v765_v32 = vmul.f32 %v2085_v34, %v2168_v37  ;;  %v766_v44 = vmul.f32 %v2117_v62, %v2168_v37  ;;  %v1213_v49 = vmul.f32 %v2145_v22, %v2362_v4 }
 0x223   :  { %v698_v48 = vsel %vm364_vm6, %v2328_v63, %v692_v16  ;;  %v735_v6 = vsel %vm408_vm7, %v728_v12, %v730_v45  ;;  %v633_v63 = vadd.f32 %v625_v19, %v597_v20  ;;  %v636_v27 = vadd.f32 %v628_v29, %v600_v17 }
 0x224   :  { %v706_v40 = vadd.f32 %v698_v48, %v670_v5  ;;  %1119 = vrot.lane.b32.xlu1 %v1105_v23, %s1546_s25  ;;  %1223 = vrot.lane.b32.xlu0 %v1211_v8, %s1549_s27  ;;  %v1176_v34 = vmul.f32 %v2134_v21, %v2322_v18  ;;  %v1210_v1 = vmul.f32 %v2145_v22, %v2336_v15 }
 0x225   :  { %v669_v43 = vadd.f32 %v661_v7, %v633_v63  ;;  %v768_v52 = vmul.f32 %v2121_v26, %v2168_v37  ;;  %v1283_v22 = vmul.f32 %v2161_v33, %v2286_v61 }
 0x226   :  { %v694_v54 = vpop.permute.xlu1 %693  ;;  %v792_v2 = vpop.permute.xlu0 %791 }
 0x227   :  { %v699_v35 = vsel %vm364_vm6, %v692_v16, %v694_v54  ;;  %v705_v38 = vadd.f32 %v697_v31, %v669_v43 }
 0x228   :  { %v707_v60 = vadd.f32 %v699_v35, %v671_v42  ;;  %1183 = vrot.lane.b32.xlu1 %v1173_v28, %s1548_s26  ;;  %1225 = vrot.lane.b32.xlu0 %v1212_v57, %s1549_s27  ;;  %v1284_v57 = vmul.f32 %v2161_v33, %v2322_v18  ;;  %v1318_v28 = vmul.f32 %v2157_v51, %v2336_v15 }
 0x22a   :  { %v743_v50 = vadd.f32 %v735_v6, %v707_v60  ;;  %v726_v58 = vpop.permute.xlu1 %725  ;;  %v796_v24 = vpop.permute.xlu0 %795  ;;  %v1177_v6 = vmul.f32 %v2134_v21, %v2362_v4  ;;  %v1245_v21 = vmul.f32 %v2149_v9, %v2272_v14 }
 0x22b   :  { %v733_v46 = vsel %vm408_vm7, %v2376_v25, %v726_v58  ;;  %v734_v30 = vsel %vm408_vm7, %v726_v58, %v728_v12  ;;  %v672_v25 = vadd.f32 %v2358_v13, %v636_v27  ;;  %v1281_v13 = vmul.f32 %v2161_v33, %v2272_v14 }
 0x22c   :  { %v741_v36 = vadd.f32 %v733_v46, %v705_v38  ;;  %v742_v56 = vadd.f32 %v734_v30, %v706_v40  ;;  %1187 = vrot.lane.b32.xlu1 %v1175_v0, %s1548_s26  ;;  %1257 = vrot.lane.b32.xlu0 %v1246_v41, %s1550_s28  ;;  %v771_v31 = vadd.f32 %v767_v55, %v743_v50 }
 0x22d   :  { %v1248_v38 = vmul.f32 %v2149_v9, %v2322_v18  ;;  %v1285_v50 = vmul.f32 %v2161_v33, %v2362_v4  ;;  %v1282_v30 = vmul.f32 %v2161_v33, %v2336_v15 }
 0x22e   :  { %v696_v39 = vpop.permute.xlu1 %695  ;;  %v828_v12 = vpop.permute.xlu0 %827  ;;  %v769_v11 = vadd.f32 %v765_v32, %v741_v36  ;;  %v770_v23 = vadd.f32 %v766_v44, %v742_v56  ;;  %v2673_v32 = vld [vmem:[#allocation6_spill] sm:$0xff] }
 0x22f   :  { %v700_v62 = vsel %vm364_vm6, %v694_v54, %v696_v39  ;;  %v1353_v44 = vmul.f32 %v2673_v32, %v2272_v14 }
 0x230   :  { %v708_v8 = vadd.f32 %v700_v62, %v672_v25  ;;  %1189 = vrot.lane.b32.xlu1 %v1176_v34, %s1548_s26  ;;  %1227 = vrot.lane.b32.xlu0 %v1213_v49, %s1549_s27  ;;  %v1249_v25 = vmul.f32 %v2149_v9, %v2362_v4  ;;  %v1317_v62 = vmul.f32 %v2157_v51, %v2272_v14 }
 0x232   :  { %v732_v47 = vpop.permute.xlu1 %731  ;;  %v832_v3 = vpop.permute.xlu0 %831 }
 0x233   :  { %v736_v5 = vsel %vm408_vm7, %v730_v45, %v732_v47 }
 0x234   :  { %v744_v16 = vadd.f32 %v736_v5, %v708_v8  ;;  %1221 = vrot.lane.b32.xlu1 %v1210_v1, %s1549_s27  ;;  %1291 = vrot.lane.b32.xlu0 %v1281_v13, %s1551_s29  ;;  %v1356_v8 = vmul.f32 %v2673_v32, %v2322_v18  ;;  %v1319_v1 = vmul.f32 %v2157_v51, %v2286_v61 }
 0x236   :  { %v794_v19 = vpop.permute.xlu1 %793  ;;  %v834_v48 = vpop.permute.xlu0 %833  ;;  %v772_v53 = vadd.f32 %v768_v52, %v744_v16 }
 0x237   :  { %v801_v20 = vsel %vm100_vm0, %v792_v2, %v794_v19  ;;  %v802_v45 = vsel %vm100_vm0, %v794_v19, %v796_v24  ;;  %v839_v40 = vsel %vm144_vm1, %v832_v3, %v834_v48  ;;  %v1247_v2 = vmul.f32 %v2149_v9, %v2286_v61 }
 0x238   :  { %v809_v10 = vadd.f32 %v801_v20, %v769_v11  ;;  %v810_v7 = vadd.f32 %v802_v45, %v770_v23  ;;  %1191 = vrot.lane.b32.xlu1 %v1177_v6, %s1548_s26  ;;  %1295 = vrot.lane.b32.xlu0 %v1283_v22, %s1551_s29  ;;  %v1320_v6 = vmul.f32 %v2157_v51, %v2322_v18 }
 0x23a   :  { %v798_v26 = vpop.permute.xlu1 %797  ;;  %v866_v37 = vpop.permute.xlu0 %865 }
 0x23b   :  { %v803_v59 = vsel %vm100_vm0, %v796_v24, %v798_v26 }
 0x23c   :  { %v811_v63 = vadd.f32 %v803_v59, %v771_v31  ;;  %1255 = vrot.lane.b32.xlu1 %v1245_v21, %s1550_s28  ;;  %1297 = vrot.lane.b32.xlu0 %v1284_v57, %s1551_s29 }
 0x23e   :  { %v830_v54 = vpop.permute.xlu1 %829  ;;  %v836_v42 = vpop.permute.xlu0 %835  ;;  %v847_v29 = vadd.f32 %v839_v40, %v811_v63  ;;  %v1354_v40 = vmul.f32 %v2673_v32, %v2336_v15 }
 0x23f   :  { %v837_v35 = vsel %vm144_vm1, %v828_v12, %v830_v54  ;;  %v838_v17 = vsel %vm144_vm1, %v830_v54, %v832_v3  ;;  %v840_v43 = vsel %vm144_vm1, %v834_v48, %v836_v42  ;;  %v1355_v12 = vmul.f32 %v2673_v32, %v2286_v61 }
 0x240   :  { %v845_v60 = vadd.f32 %v837_v35, %v809_v10  ;;  %v846_v0 = vadd.f32 %v838_v17, %v810_v7  ;;  %1259 = vrot.lane.b32.xlu1 %v1247_v2, %s1550_s28  ;;  %1329 = vrot.lane.b32.xlu0 %v1318_v28, %s1552_s30  ;;  %v1357_v54 = vmul.f32 %v2673_v32, %v2362_v4 }
 0x242   :  { %v800_v55 = vpop.permute.xlu1 %799  ;;  %v900_v27 = vpop.permute.xlu0 %899 }
 0x243   :  { %v804_v58 = vsel %vm100_vm0, %v798_v26, %v800_v55 }
 0x244   :  { %v812_v24 = vadd.f32 %v804_v58, %v772_v53  ;;  %1261 = vrot.lane.b32.xlu1 %v1248_v38, %s1550_s28  ;;  %1299 = vrot.lane.b32.xlu0 %v1285_v50, %s1551_s29 }
 0x246   :  { %v864_v41 = vpop.permute.xlu1 %863  ;;  %v904_v46 = vpop.permute.xlu0 %903  ;;  %v848_v36 = vadd.f32 %v840_v43, %v812_v24 }
 0x247   :  { %v873_v56 = vsel %vm188_vm2, %v864_v41, %v866_v37 }
 0x248   :  { %v881_v31 = vadd.f32 %v873_v56, %v845_v60  ;;  %1293 = vrot.lane.b32.xlu1 %v1282_v30, %s1551_s29  ;;  %1363 = vrot.lane.b32.xlu0 %v1353_v44, %s1553_s7 }
 0x24a   :  { %v868_v49 = vpop.permute.xlu1 %867  ;;  %v906_v39 = vpop.permute.xlu0 %905 }
 0x24b   :  { %v874_v33 = vsel %vm188_vm2, %v866_v37, %v868_v49  ;;  %v911_v34 = vsel %vm232_vm3, %v904_v46, %v906_v39  ;;  %v1321_v37 = vmul.f32 %v2157_v51, %v2362_v4 }
 0x24c   :  { %v882_v11 = vadd.f32 %v874_v33, %v846_v0  ;;  %1263 = vrot.lane.b32.xlu1 %v1249_v25, %s1550_s28  ;;  %1367 = vrot.lane.b32.xlu0 %v1355_v12, %s1553_s7 }
 0x24e   :  { %v870_v23 = vpop.permute.xlu1 %869  ;;  %v938_v20 = vpop.permute.xlu0 %937 }
 0x24f   :  { %v875_v9 = vsel %vm188_vm2, %v868_v49, %v870_v23 }
 0x250   :  { %v883_v47 = vadd.f32 %v875_v9, %v847_v29  ;;  %1327 = vrot.lane.b32.xlu1 %v1317_v62, %s1552_s30  ;;  %1369 = vrot.lane.b32.xlu0 %v1356_v8, %s1553_s7 }
 0x252   :  { %v902_v3 = vpop.permute.xlu1 %901  ;;  %v919_v13 = vadd.f32 %v911_v34, %v883_v47 }
 0x253   :  { %v909_v5 = vsel %vm232_vm3, %v900_v27, %v902_v3  ;;  %v910_v16 = vsel %vm232_vm3, %v902_v3, %v904_v46 }
 0x254   :  { %v917_v52 = vadd.f32 %v909_v5, %v881_v31  ;;  %v918_v19 = vadd.f32 %v910_v16, %v882_v11  ;;  %1331 = vrot.lane.b32.xlu1 %v1319_v1, %s1552_s30 }
 0x256   :  { %v872_v48 = vpop.permute.xlu1 %871 }
 0x257   :  { %v876_v22 = vsel %vm188_vm2, %v870_v23, %v872_v48 }
 0x258   :  { %v884_v53 = vadd.f32 %v876_v22, %v848_v36  ;;  %1333 = vrot.lane.b32.xlu1 %v1320_v6, %s1552_s30 }
 0x25a   :  { %v936_v45 = vpop.permute.xlu1 %935 }
 0x25b   :  { %v945_v10 = vsel %vm276_vm4, %v936_v45, %v938_v20 }
 0x25c   :  { %v953_v7 = vadd.f32 %v945_v10, %v917_v52  ;;  %1365 = vrot.lane.b32.xlu1 %v1354_v40, %s1553_s7 }
 0x25e   :  { %v940_v26 = vpop.permute.xlu1 %939 }
 0x25f   :  { %v946_v21 = vsel %vm276_vm4, %v938_v20, %v940_v26  ;;  %v1067_v57 = vpop.permute.xlu0 %1066 }
 0x260   :  { %v954_v59 = vadd.f32 %v946_v21, %v918_v19  ;;  %1335 = vrot.lane.b32.xlu1 %v1321_v37, %s1552_s30  ;;  %v1085_v8 = vmul.f32 %v2272_v14, %v1067_v57  ;;  %v1086_v1 = vmul.f32 %v2336_v15, %v1067_v57  ;;  %v1087_v52 = vmul.f32 %v2286_v61, %v1067_v57 }
 0x261   :  { %v1088_v15 = vmul.f32 %v2322_v18, %v1067_v57 }
 0x262   :  { %v908_v63 = vpop.permute.xlu1 %907 }
 0x263   :  { %v912_v42 = vsel %vm232_vm3, %v906_v39, %v908_v63  ;;  %v972_v2 = vpop.permute.xlu0 %971 }
 0x264   :  { %v920_v28 = vadd.f32 %v912_v42, %v884_v53  ;;  %1371 = vrot.lane.b32.xlu1 %v1357_v54, %s1553_s7 }
 0x266   :  { %v942_v29 = vpop.permute.xlu1 %941 }
 0x267   :  { %v947_v35 = vsel %vm276_vm4, %v940_v26, %v942_v29  ;;  %v976_v51 = vpop.permute.xlu0 %975 }
 0x268   :  { %v955_v17 = vadd.f32 %v947_v35, %v919_v13 }
 0x26a   :  { %v974_v43 = vpop.permute.xlu1 %973 }
 0x26b   :  { %v981_v60 = vsel %vm320_vm5, %v972_v2, %v974_v43  ;;  %v982_v0 = vsel %vm320_vm5, %v974_v43, %v976_v51  ;;  %v978_v55 = vpop.permute.xlu0 %977 }
 0x26c   :  { %v989_v27 = vadd.f32 %v981_v60, %v953_v7  ;;  %v990_v38 = vadd.f32 %v982_v0, %v954_v59  ;;  %v983_v4 = vsel %vm320_vm5, %v976_v51, %v978_v55 }
 0x26d   :  { %v991_v50 = vadd.f32 %v983_v4, %v955_v17 }
 0x26e   :  { %v944_v58 = vpop.permute.xlu1 %943 }
 0x26f   :  { %v948_v24 = vsel %vm276_vm4, %v942_v29, %v944_v58  ;;  %v1010_v41 = vpop.permute.xlu0 %1009 }
 0x270   :  { %v956_v46 = vadd.f32 %v948_v24, %v920_v28 }
 0x272   :  { %v1008_v30 = vpop.permute.xlu1 %1007 }
 0x273   :  { %v1017_v32 = vsel %vm364_vm6, %v1008_v30, %v1010_v41  ;;  %v980_v44 = vpop.permute.xlu0 %979 }
 0x274   :  { %v1025_v36 = vadd.f32 %v1017_v32, %v989_v27  ;;  %v984_v56 = vsel %vm320_vm5, %v978_v55, %v980_v44 }
 0x275   :  { %v992_v31 = vadd.f32 %v984_v56, %v956_v46 }
 0x276   :  { %v1012_v49 = vpop.permute.xlu1 %1011 }
 0x277   :  { %v1018_v39 = vsel %vm364_vm6, %v1010_v41, %v1012_v49  ;;  %v1044_v25 = vpop.permute.xlu0 %1043 }
 0x278   :  { %v1026_v12 = vadd.f32 %v1018_v39, %v990_v38 }
 0x27a   :  { %v1014_v33 = vpop.permute.xlu1 %1013 }
 0x27b   :  { %v1019_v34 = vsel %vm364_vm6, %v1012_v49, %v1014_v33  ;;  %v1048_v11 = vpop.permute.xlu0 %1047 }
 0x27c   :  { %v1027_v23 = vadd.f32 %v1019_v34, %v991_v50 }
 0x27e   :  { %v1046_v62 = vpop.permute.xlu1 %1045 }
 0x27f   :  { %v1053_v9 = vsel %vm408_vm7, %v1044_v25, %v1046_v62  ;;  %v1054_v47 = vsel %vm408_vm7, %v1046_v62, %v1048_v11  ;;  %v1050_v3 = vpop.permute.xlu0 %1049 }
 0x280   :  { %v1061_v13 = vadd.f32 %v1053_v9, %v1025_v36  ;;  %v1062_v5 = vadd.f32 %v1054_v47, %v1026_v12  ;;  %v1055_v16 = vsel %vm408_vm7, %v1048_v11, %v1050_v3 }
 0x281   :  { %v1063_v19 = vadd.f32 %v1055_v16, %v1027_v23 }
 0x282   :  { %v1016_v48 = vpop.permute.xlu1 %1015  ;;  %v1089_v6 = vadd.f32 %v1085_v8, %v1061_v13  ;;  %v1090_v22 = vadd.f32 %v1086_v1, %v1062_v5 }
 0x283   :  { %v1020_v53 = vsel %vm364_vm6, %v1014_v33, %v1016_v48  ;;  %v1112_v14 = vpop.permute.xlu0 %1111  ;;  %v1091_v20 = vadd.f32 %v1087_v52, %v1063_v19 }
 0x284   :  { %v1028_v45 = vadd.f32 %v1020_v53, %v992_v31 }
 0x286   :  { %v1052_v40 = vpop.permute.xlu1 %1051 }
 0x287   :  { %v1056_v10 = vsel %vm408_vm7, %v1050_v3, %v1052_v40  ;;  %v1116_v7 = vpop.permute.xlu0 %1115 }
 0x288   :  { %v1064_v26 = vadd.f32 %v1056_v10, %v1028_v45 }
 0x28a   :  { %v1114_v37 = vpop.permute.xlu1 %1113  ;;  %v1092_v21 = vadd.f32 %v1088_v15, %v1064_v26 }
 0x28b   :  { %v1148_v59 = vpop.permute.xlu0 %1147  ;;  %v1121_v32 = vsel %vm100_vm0, %v1112_v14, %v1114_v37  ;;  %v1122_v44 = vsel %vm100_vm0, %v1114_v37, %v1116_v7 }
 0x28c   :  { %v1129_v39 = vadd.f32 %v1121_v32, %v1089_v6  ;;  %v1130_v25 = vadd.f32 %v1122_v44, %v1090_v22  ;;  %v2675_v32 = vld [vmem:[#allocation4_spill] sm:$0xff] }
 0x28e   :  { %v1118_v61 = vpop.permute.xlu1 %1117 }
 0x28f   :  { %v1152_v63 = vpop.permute.xlu0 %1151  ;;  %v1123_v56 = vsel %vm100_vm0, %v1116_v7, %v1118_v61 }
 0x290   :  { %v1131_v62 = vadd.f32 %v1123_v56, %v1091_v20 }
 0x292   :  { %v1150_v54 = vpop.permute.xlu1 %1149 }
 0x293   :  { %v1154_v42 = vpop.permute.xlu0 %1153  ;;  %v1157_v31 = vsel %vm144_vm1, %v1148_v59, %v1150_v54  ;;  %v1158_v49 = vsel %vm144_vm1, %v1150_v54, %v1152_v63 }
 0x294   :  { %v1159_v33 = vsel %vm144_vm1, %v1152_v63, %v1154_v42  ;;  %v1165_v8 = vadd.f32 %v1157_v31, %v1129_v39  ;;  %v1166_v9 = vadd.f32 %v1158_v49, %v1130_v25 }
 0x295   :  { %v1167_v13 = vadd.f32 %v1159_v33, %v1131_v62 }
 0x296   :  { %v1120_v2 = vpop.permute.xlu1 %1119 }
 0x297   :  { %v1186_v28 = vpop.permute.xlu0 %1185  ;;  %v1124_v5 = vsel %vm100_vm0, %v1118_v61, %v1120_v2 }
 0x298   :  { %v1132_v10 = vadd.f32 %v1124_v5, %v1092_v21 }
 0x29a   :  { %v1184_v29 = vpop.permute.xlu1 %1183 }
 0x29b   :  { %v1156_v35 = vpop.permute.xlu0 %1155  ;;  %v1193_v34 = vsel %vm188_vm2, %v1184_v29, %v1186_v28 }
 0x29c   :  { %v1201_v16 = vadd.f32 %v1193_v34, %v1165_v8  ;;  %v1160_v14 = vsel %vm144_vm1, %v1154_v42, %v1156_v35  ;;  %v1385_v42 = vld [vmem:[%s2658_s5] sm:$0xf]  ;;  %v2676_v34 = vld [vmem:[#allocation5_spill] sm:$0xff] }
 0x29d   :  { %v1168_v2 = vadd.f32 %v1160_v14, %v1132_v10 }
 0x29e   :  { %v1188_v51 = vpop.permute.xlu1 %1187 }
 0x29f   :  { %v1220_v17 = vpop.permute.xlu0 %1219  ;;  %v1194_v11 = vsel %vm188_vm2, %v1186_v28, %v1188_v51 }
 0x2a0   :  { %v1202_v52 = vadd.f32 %v1194_v11, %v1166_v9  ;;  %v1398_v11 = vrot.slane %v1385_v42, %v2676_v34 }
 0x2a2   :  { %v1190_v43 = vpop.permute.xlu1 %1189 }
 0x2a3   :  { %v1224_v60 = vpop.permute.xlu0 %1223  ;;  %v1195_v47 = vsel %vm188_vm2, %v1188_v51, %v1190_v43 }
 0x2a4   :  { %v1203_v20 = vadd.f32 %v1195_v47, %v1167_v13 }
 0x2a6   :  { %v1222_v0 = vpop.permute.xlu1 %1221 }
 0x2a7   :  { %v1226_v55 = vpop.permute.xlu0 %1225  ;;  %v1229_v3 = vsel %vm232_vm3, %v1220_v17, %v1222_v0  ;;  %v1230_v1 = vsel %vm232_vm3, %v1222_v0, %v1224_v60 }
 0x2a8   :  { %v1231_v48 = vsel %vm232_vm3, %v1224_v60, %v1226_v55  ;;  %v1237_v45 = vadd.f32 %v1229_v3, %v1201_v16  ;;  %v1238_v40 = vadd.f32 %v1230_v1, %v1202_v52  ;;  %v2677_v16 = vld [vmem:[#allocation2_spill] sm:$0xff] }
 0x2a9   :  { %v1239_v37 = vadd.f32 %v1231_v48, %v1203_v20  ;;  %v2678_v52 = vsub.s32 3, %v2677_v16 }
 0x2aa   :  { %v1192_v27 = vpop.permute.xlu1 %1191 }
 0x2ab   :  { %v1258_v18 = vpop.permute.xlu0 %1257  ;;  %v1196_v59 = vsel %vm188_vm2, %v1190_v43, %v1192_v27 }
 0x2ac   :  { %v1204_v0 = vadd.f32 %v1196_v59, %v1168_v2 }
 0x2ae   :  { %v1256_v57 = vpop.permute.xlu1 %1255 }
 0x2af   :  { %v1228_v38 = vpop.permute.xlu0 %1227  ;;  %v1265_v6 = vsel %vm276_vm4, %v1256_v57, %v1258_v18 }
 0x2b0   :  { %v1273_v61 = vadd.f32 %v1265_v6, %v1237_v45  ;;  %v1232_v51 = vsel %vm232_vm3, %v1226_v55, %v1228_v38 }
 0x2b1   :  { %v1240_v56 = vadd.f32 %v1232_v51, %v1204_v0 }
 0x2b2   :  { %v1260_v4 = vpop.permute.xlu1 %1259 }
 0x2b3   :  { %v1292_v50 = vpop.permute.xlu0 %1291  ;;  %v1266_v22 = vsel %vm276_vm4, %v1258_v18, %v1260_v4  ;;  %v2674_v18 = vld [vmem:[#allocation3_spill] sm:$0xff] }
 0x2b4   :  { %v1274_v63 = vadd.f32 %v1266_v22, %v1238_v40  ;;  %v1390_v57 = vrot.slane %v1385_v42, %v2674_v18 }
 0x2b6   :  { %v2586_v58 = vpop.permute.xlu1 %1261 }
 0x2b7   :  { %v1296_v24 = vpop.permute.xlu0 %1295  ;;  %v1267_v7 = vsel %vm276_vm4, %v1260_v4, %v2586_v58 }
 0x2b8   :  { %v1275_v17 = vadd.f32 %v1267_v7, %v1239_v37 }
 0x2ba   :  { %v1294_v41 = vpop.permute.xlu1 %1293 }
 0x2bb   :  { %v2588_v46 = vpop.permute.xlu0 %1297  ;;  %v1301_v15 = vsel %vm320_vm5, %v1292_v50, %v1294_v41  ;;  %v1302_v26 = vsel %vm320_vm5, %v1294_v41, %v1296_v24 }
 0x2bc   :  { %v1303_v21 = vsel %vm320_vm5, %v1296_v24, %v2588_v46  ;;  %v1309_v43 = vadd.f32 %v1301_v15, %v1273_v61  ;;  %v1310_v60 = vadd.f32 %v1302_v26, %v1274_v63  ;;  %v1394_v24 = vrot.slane %v1385_v42, %v2675_v32 }
 0x2bd   :  { %v1311_v4 = vadd.f32 %v1303_v21, %v1275_v17 }
 0x2be   :  { %v2590_v30 = vpop.permute.xlu1 %1263 }
 0x2bf   :  { %v1330_v36 = vpop.permute.xlu0 %1329 }
 0x2c2   :  { %v1328_v12 = vpop.permute.xlu1 %1327 }
 0x2c3   :  { %v1300_v23 = vpop.permute.xlu0 %1299  ;;  %v1337_v28 = vsel %vm364_vm6, %v1328_v12, %v1330_v36 }
 0x2c4   :  { %v1345_v50 = vadd.f32 %v1337_v28, %v1309_v43  ;;  %v1304_v33 = vsel %vm320_vm5, %v2588_v46, %v1300_v23  ;;  %v1435_v43 = vld [vmem:[%s2660_s3] sm:$0xff] }
 0x2c6   :  { %v1332_v19 = vpop.permute.xlu1 %1331 }
 0x2c7   :  { %v1364_v53 = vpop.permute.xlu0 %1363  ;;  %v1338_v29 = vsel %vm364_vm6, %v1330_v36, %v1332_v19  ;;  %v1268_v36 = vsel %vm276_vm4, %v2586_v58, %v2590_v30 }
 0x2c8   :  { %v1346_v41 = vadd.f32 %v1338_v29, %v1310_v60  ;;  %v1276_v62 = vadd.f32 %v1268_v36, %v1240_v56  ;;  %v1448_v29 = vld [vmem:[%s2659_s4] sm:$0xff] }
 0x2ca   :  { %v1334_v54 = vpop.permute.xlu1 %1333  ;;  %v1312_v3 = vadd.f32 %v1304_v33, %v1276_v62 }
 0x2cb   :  { %v1368_v35 = vpop.permute.xlu0 %1367  ;;  %v1339_v27 = vsel %vm364_vm6, %v1332_v19, %v1334_v54  ;;  %v1402_v19 = vrot.slane %v1385_v42, %v2678_v52 }
 0x2cc   :  { %v1347_v49 = vadd.f32 %v1339_v27, %v1311_v4 }
 0x2ce   :  { %v1366_v44 = vpop.permute.xlu1 %1365 }
 0x2cf   :  { %v1373_v55 = vsel %vm408_vm7, %v1364_v53, %v1366_v44  ;;  %v1374_v38 = vsel %vm408_vm7, %v1366_v44, %v1368_v35  ;;  %v1370_v31 = vpop.permute.xlu0 %1369 }
 0x2d0   :  { %v1381_v39 = vadd.f32 %v1373_v55, %v1345_v50  ;;  %v1382_v25 = vadd.f32 %v1374_v38, %v1346_v41  ;;  %v1375_v12 = vsel %vm408_vm7, %v1368_v35, %v1370_v31 }
 0x2d1   :  { %v1383_v47 = vadd.f32 %v1375_v12, %v1347_v49 }
 0x2d2   :  { %v1407_v8 = vmul.f32 %v1390_v57, %v1381_v39  ;;  %v1408_v9 = vmul.f32 %v1394_v24, %v1382_v25  ;;  %v1336_v58 = vpop.permute.xlu1 %1335 }
 0x2d3   :  { %v1340_v30 = vsel %vm364_vm6, %v1334_v54, %v1336_v58  ;;  %v1409_v13 = vmul.f32 %v1398_v11, %v1383_v47 }
 0x2d4   :  { %v1411_v1 = vadd.f32 %v1408_v9, %v1407_v8  ;;  %v1348_v5 = vadd.f32 %v1340_v30, %v1312_v3 }
 0x2d6   :  { %v1372_v48 = vpop.permute.xlu1 %1371  ;;  %v1412_v22 = vadd.f32 %v1411_v1, %v1409_v13 }
 0x2d7   :  { %v1376_v6 = vsel %vm408_vm7, %v1370_v31, %v1372_v48 }
 0x2d8   :  { %v1384_v46 = vadd.f32 %v1376_v6, %v1348_v5 }
 0x2da   :  { %v1410_v23 = vmul.f32 %v1402_v19, %v1384_v46 }
 0x2dc   :  { %v1413_v53 = vadd.f32 %v1412_v22, %v1410_v23 }
 0x2de   :  { %1414 = vadd.xlane.f32.xlu0 %v1413_v53 }
 0x36b   :  { %v1415_v14 = vpop.xlane.xlu0 %1414 }
 0x36c   :  { %v1416_v20 = vmul.f32 0.0034722222, %v1415_v14 }
 0x36e   :  { %v1417_v45 = vsub.f32 %v1381_v39, %v1416_v20  ;;  %v1418_v40 = vsub.f32 %v1382_v25, %v1416_v20  ;;  %v1419_v10 = vsub.f32 %v1383_v47, %v1416_v20  ;;  %v1420_v7 = vsub.f32 %v1384_v46, %v1416_v20 }
 0x370   :  { %v1421_v15 = vmul.f32 %v1417_v45, %v1417_v45  ;;  %v1422_v26 = vmul.f32 %v1418_v40, %v1418_v40  ;;  %v1423_v37 = vmul.f32 %v1419_v10, %v1419_v10  ;;  %v1424_v59 = vmul.f32 %v1420_v7, %v1420_v7 }
 0x372   :  { %v1425_v61 = vmul.f32 %v1421_v15, %v1390_v57  ;;  %v1426_v63 = vmul.f32 %v1422_v26, %v1394_v24  ;;  %v1427_v54 = vmul.f32 %v1423_v37, %v1398_v11  ;;  %v1428_v2 = vmul.f32 %v1424_v59, %v1402_v19 }
 0x374   :  { %v1429_v42 = vadd.f32 %v1426_v63, %v1425_v61 }
 0x376   :  { %v1430_v21 = vadd.f32 %v1429_v42, %v1427_v54 }
 0x378   :  { %v1431_v28 = vadd.f32 %v1430_v21, %v1428_v2 }
 0x37a   :  { %1432 = vadd.xlane.f32.xlu1 %v1431_v28 }
 0x38b   :  { %1451 = vperm.xlu1 %1531, %v1448_v29  }
 0x407   :  { %v1433_v35 = vpop.xlane.xlu1 %1432 }
 0x408   :  { %v1434_v51 = vmul.f32 0.0034722222, %v1433_v35 }
 0x40a   :  { %v1436_v17 = vadd.f32 1e-05, %v1434_v51 }
 0x40b   :  { %v1452_v41 = vpop.permute.xlu1 %1451 }
 0x40c   :  { %1535 = vrsqrt.f32 %v1436_v17 }
 0x416   :  { %v1536_v60 = vpop.eup %1535 }
 0x417   :  { %v1438_v0 = vmul.f32 %v1536_v60, %v1435_v43 }
 0x419   :  { %1441 = vperm.xlu0 %1534, %v1438_v0  }
 0x498   :  { %v1442_v27 = vpop.permute.xlu0 %1441 }
 0x499   :  { %v1444_v18 = vmul.f32 %v1442_v27, %v1417_v45  ;;  %v1445_v57 = vmul.f32 %v1442_v27, %v1418_v40  ;;  %v1446_v4 = vmul.f32 %v1442_v27, %v1419_v10  ;;  %v1447_v50 = vmul.f32 %v1442_v27, %v1420_v7 }
 0x49b   :  { %v1454_v32 = vadd.f32 %v1452_v41, %v1444_v18  ;;  %v1455_v24 = vadd.f32 %v1452_v41, %v1445_v57  ;;  %v1456_v44 = vadd.f32 %v1452_v41, %v1446_v4  ;;  %v1457_v56 = vadd.f32 %v1452_v41, %v1447_v50 }
 0x49d   :  { %1458 = vst [vmem:[%s2661_s6] sm:$0xff] %v1454_v32  ;;  %1459 = vst [vmem:[%s2661_s6 + $0x8] sm:$0xff] %v1455_v24 }
 0x49e   :  { %1460 = vst [vmem:[%s2661_s6 + $0x10] sm:$0xff] %v1456_v44  ;;  %1461 = vst [vmem:[%s2661_s6 + $0x18] sm:$0xff] %v1457_v56 }

</bundles_post_ra>
